<compile_context>
chip_gen: v7x
topology: tpu7x:2x2x1
jax: 0.10.0
libtpu: 0.0.40
codegen_flags: <defaults>
</compile_context>

<pallas_src>
import math
from functools import partial

import jax
import jax.numpy as jnp
from jax import lax
from jax.experimental import pallas as pl
from jax.experimental.pallas import tpu as pltpu

BATCH = 2
SEQ = 8
HIDDEN = 32
N_HEADS = 4
HEAD_DIM = HIDDEN // N_HEADS
FFN = 4 * HIDDEN
N_LAYERS = 2
VOCAB = 100
MAX_POS = 16
NUM_CLASSES = 6
LOGIT_PAD = 128          # lane-dense logits slab width
LN_EPS = 1e-12
MASK_NEG = -1e9          # additive mask bias (safer than finfo.min under subtraction)

_VMEM = pl.BlockSpec(memory_space=pltpu.MemorySpace.VMEM)


# ---------------------------------------------------------------- fused kernel ---

def _fused_forward_kernel(
    x_ref, bias_ref,
    emb_g_ref, emb_b_ref,
    wqkv_ref, bqkv_ref, wo_ref, bo_ref, sa_g_ref, sa_b_ref,
    w1_ref, b1_ref, w2_ref, b2_ref, out_g_ref, out_b_ref,
    wc_ref, bc_ref,
    logits_ref, pooled_ref,
):
    def ln(h, g, b):
        mu = jnp.mean(h, axis=-1, keepdims=True)
        var = jnp.mean((h - mu) ** 2, axis=-1, keepdims=True)
        return (h - mu) * lax.rsqrt(var + LN_EPS) * g + b

    scale = 1.0 / math.sqrt(HEAD_DIM)
    bias = bias_ref[...][:, None, :]                    # (B, 1, S_k) additive: 0 / -1e9

    # Embedding LayerNorm (word+pos sum is computed in the wrapper; gather is glue).
    x = x_ref[...].astype(jnp.float32)                  # (B*S, HIDDEN)
    h = ln(x, emb_g_ref[...], emb_b_ref[...])
    # embedding dropout: identity at inference

    for li in range(N_LAYERS):                          # static unroll: weights stay in VMEM
        # --- Multi-head self-attention ------------------------------------
        # Fused QKV projection: one (B*S, H) x (H, 3H) MXU push.
        qkv = jnp.dot(h, wqkv_ref[li], preferred_element_type=jnp.float32) + bqkv_ref[li]
        q3 = (qkv[:, 0 * HIDDEN:1 * HIDDEN] * scale).reshape(BATCH, SEQ, HIDDEN)
        k3 = qkv[:, 1 * HIDDEN:2 * HIDDEN].reshape(BATCH, SEQ, HIDDEN)
        v3 = qkv[:, 2 * HIDDEN:3 * HIDDEN].reshape(BATCH, SEQ, HIDDEN)

        wo = wo_ref[li]                                 # (HIDDEN, HIDDEN)
        attn_acc = jnp.zeros((BATCH * SEQ, HIDDEN), jnp.float32)
        for hd in range(N_HEADS):                       # static head loop, batched over B
            sl = slice(hd * HEAD_DIM, (hd + 1) * HEAD_DIM)
            s = jnp.einsum('bqd,bkd->bqk', q3[:, :, sl], k3[:, :, sl],
                           preferred_element_type=jnp.float32)      # (B, S, S)
            s = s + bias
            s = s - jnp.max(s, axis=-1, keepdims=True)
            p = jnp.exp(s)
            p = p / jnp.sum(p, axis=-1, keepdims=True)
            ctx = jnp.einsum('bqk,bkd->bqd', p, v3[:, :, sl],
                             preferred_element_type=jnp.float32)    # (B, S, D)
            # Fold head-concat into the output projection:
            #   concat_h(ctx_h) @ Wo == sum_h ctx_h @ Wo[h*D:(h+1)*D, :]
            attn_acc = attn_acc + jnp.dot(ctx.reshape(BATCH * SEQ, HEAD_DIM), wo[sl, :],
                                          preferred_element_type=jnp.float32)
        attn_out = attn_acc + bo_ref[li]
        h = ln(attn_out + h, sa_g_ref[li], sa_b_ref[li])

        # --- Feed-forward ---------------------------------------------------
        ff = jnp.dot(h, w1_ref[li], preferred_element_type=jnp.float32) + b1_ref[li]
        # TODO(synk): HF DistilBERT uses exact erf-GELU; tanh approximation used here.
        ff = 0.5 * ff * (1.0 + jnp.tanh(0.7978845608028654 * (ff + 0.044715 * ff * ff * ff)))
        ff = jnp.dot(ff, w2_ref[li], preferred_element_type=jnp.float32) + b2_ref[li]
        h = ln(ff + h, out_g_ref[li], out_b_ref[li])

    # --- Pooling + classifier head (inside the kernel) -----------------------
    pooled = h.reshape(BATCH, SEQ, HIDDEN)[:, 0, :]      # [CLS]-position pooling (B, HIDDEN)
    pooled_ref[...] = pooled.astype(pooled_ref.dtype)
    # nn.Dropout(0.5): identity in eval mode
    # Lane-dense (B, 128) logits slab; wc/bc are zero-padded along the class axis.
    logits_ref[...] = (jnp.dot(pooled, wc_ref[...], preferred_element_type=jnp.float32)
                       + bc_ref[...]).astype(logits_ref.dtype)


def fused_forward(x2, bias, params):
    return pl.pallas_call(
        _fused_forward_kernel,
        out_shape=(jax.ShapeDtypeStruct((BATCH, LOGIT_PAD), jnp.float32),
                   jax.ShapeDtypeStruct((BATCH, HIDDEN), jnp.float32)),
        in_specs=[_VMEM] * 18,
        out_specs=(_VMEM, _VMEM),
    )(x2, bias,
      params["emb_ln_g"], params["emb_ln_b"],
      params["wqkv"], params["bqkv"], params["wo"], params["bo"],
      params["sa_ln_g"], params["sa_ln_b"],
      params["w1"], params["b1"], params["w2"], params["b2"],
      params["out_ln_g"], params["out_ln_b"],
      params["wc_pad"], params["bc_pad"])


# ------------------------------------------------------------- parameters ---

def init_params(key):
    def dense_w(k, din, dout):
        return 0.02 * jax.random.normal(k, (din, dout), jnp.float32)

    keys = jax.random.split(key, 3 + N_LAYERS)
    params = {
        "word_emb": 0.02 * jax.random.normal(keys[0], (VOCAB, HIDDEN), jnp.float32),
        "pos_emb": 0.02 * jax.random.normal(keys[1], (MAX_POS, HIDDEN), jnp.float32),
        "emb_ln_g": jnp.ones((1, HIDDEN), jnp.float32),
        "emb_ln_b": jnp.zeros((1, HIDDEN), jnp.float32),
    }

    wqkv_l, wo_l, w1_l, w2_l = [], [], [], []
    for li in range(N_LAYERS):
        lk = jax.random.split(keys[2 + li], 6)
        wq = dense_w(lk[0], HIDDEN, HIDDEN)
        wk = dense_w(lk[1], HIDDEN, HIDDEN)
        wv = dense_w(lk[2], HIDDEN, HIDDEN)
        wqkv_l.append(jnp.concatenate([wq, wk, wv], axis=1))       # (H, 3H)
        wo_l.append(dense_w(lk[3], HIDDEN, HIDDEN))
        w1_l.append(dense_w(lk[4], HIDDEN, FFN))
        w2_l.append(dense_w(lk[5], FFN, HIDDEN))

    params["wqkv"] = jnp.stack(wqkv_l)                             # (L, H, 3H)
    params["bqkv"] = jnp.zeros((N_LAYERS, 1, 3 * HIDDEN), jnp.float32)
    params["wo"] = jnp.stack(wo_l)                                 # (L, H, H)
    params["bo"] = jnp.zeros((N_LAYERS, 1, HIDDEN), jnp.float32)
    params["sa_ln_g"] = jnp.ones((N_LAYERS, 1, HIDDEN), jnp.float32)
    params["sa_ln_b"] = jnp.zeros((N_LAYERS, 1, HIDDEN), jnp.float32)
    params["w1"] = jnp.stack(w1_l)                                 # (L, H, FFN)
    params["b1"] = jnp.zeros((N_LAYERS, 1, FFN), jnp.float32)
    params["w2"] = jnp.stack(w2_l)                                 # (L, FFN, H)
    params["b2"] = jnp.zeros((N_LAYERS, 1, HIDDEN), jnp.float32)
    params["out_ln_g"] = jnp.ones((N_LAYERS, 1, HIDDEN), jnp.float32)
    params["out_ln_b"] = jnp.zeros((N_LAYERS, 1, HIDDEN), jnp.float32)

    wc = dense_w(keys[2 + N_LAYERS], HIDDEN, NUM_CLASSES)
    params["wc_pad"] = jnp.zeros((HIDDEN, LOGIT_PAD), jnp.float32).at[:, :NUM_CLASSES].set(wc)
    params["bc_pad"] = jnp.zeros((1, LOGIT_PAD), jnp.float32)
    return params


# ----------------------------------------------------------------- forward ---

def distilbert_classifier(params, input_id, mask, ret_rep=0):
    B, S = input_id.shape
    # Embedding gathers are glue (data-dependent row gather); LN + rest run in the kernel.
    x = params["word_emb"][input_id] + params["pos_emb"][jnp.arange(S)][None, :, :]
    x2 = x.reshape(B * S, HIDDEN).astype(jnp.float32)
    # Precompute the attention mask as an additive f32 bias (0 keep / -1e9 drop).
    bias = jnp.where(mask != 0, 0.0, MASK_NEG).astype(jnp.float32)

    logits_pad, pooled_output = fused_forward(x2, bias, params)
    linear_output = logits_pad[:, :NUM_CLASSES]          # (B, NUM_CLASSES)

    if ret_rep == 0:
        return linear_output
    elif ret_rep == 1:
        return (linear_output, linear_output)
    else:  # ret_rep == 2
        return (linear_output, pooled_output)


# -------------------------------------------------------------------- main ---

if __name__ == "__main__":
    root = jax.random.PRNGKey(0)
    kp, kid = jax.random.split(root)
    params = init_params(kp)

    input_id = jax.random.randint(kid, (BATCH, SEQ), 0, VOCAB, dtype=jnp.int32)
    mask = jnp.ones((BATCH, SEQ), jnp.int32)
    mask = mask.at[1, SEQ - 2:].set(0)                   # pad the tail of the second example

    fwd = jax.jit(partial(distilbert_classifier, ret_rep=0))
    logits = fwd(params, input_id, mask)
    jax.block_until_ready(logits)
    assert logits.shape == (BATCH, NUM_CLASSES)
    assert bool(jnp.all(jnp.isfinite(logits)))
    print("KERNEL_OK")
</pallas_src>

<mosaic_0001>
module attributes {stable_mosaic.version = 11 : i64} {
  func.func @_fused_forward_kernel(%arg0: memref<16x32xf32, #tpu.memory_space<vmem>>, %arg1: memref<2x8xf32, #tpu.memory_space<vmem>>, %arg2: memref<1x32xf32, #tpu.memory_space<vmem>>, %arg3: memref<1x32xf32, #tpu.memory_space<vmem>>, %arg4: memref<2x32x96xf32, #tpu.memory_space<vmem>>, %arg5: memref<2x1x96xf32, #tpu.memory_space<vmem>>, %arg6: memref<2x32x32xf32, #tpu.memory_space<vmem>>, %arg7: memref<2x1x32xf32, #tpu.memory_space<vmem>>, %arg8: memref<2x1x32xf32, #tpu.memory_space<vmem>>, %arg9: memref<2x1x32xf32, #tpu.memory_space<vmem>>, %arg10: memref<2x32x128xf32, #tpu.memory_space<vmem>>, %arg11: memref<2x1x128xf32, #tpu.memory_space<vmem>>, %arg12: memref<2x128x32xf32, #tpu.memory_space<vmem>>, %arg13: memref<2x1x32xf32, #tpu.memory_space<vmem>>, %arg14: memref<2x1x32xf32, #tpu.memory_space<vmem>>, %arg15: memref<2x1x32xf32, #tpu.memory_space<vmem>>, %arg16: memref<32x128xf32, #tpu.memory_space<vmem>>, %arg17: memref<1x128xf32, #tpu.memory_space<vmem>>, %arg18: memref<2x128xf32, #tpu.memory_space<vmem>>, %arg19: memref<2x32xf32, #tpu.memory_space<vmem>>) attributes {dimension_semantics = [], scalar_prefetch = 0 : i64, scratch_operands = 0 : i64, tpu.core_type = #tpu.core_type<tc>} {
    %c0 = arith.constant 0 : index
    %c0_0 = arith.constant 0 : index
    %0 = vector.load %arg1[%c0, %c0_0] : memref<2x8xf32, #tpu.memory_space<vmem>>, vector<2x8xf32>
    %1 = vector.shape_cast %0 : vector<2x8xf32> to vector<2x1x8xf32>
    %c0_1 = arith.constant 0 : index
    %c0_2 = arith.constant 0 : index
    %2 = vector.load %arg0[%c0_1, %c0_2] : memref<16x32xf32, #tpu.memory_space<vmem>>, vector<16x32xf32>
    %c0_3 = arith.constant 0 : index
    %c0_4 = arith.constant 0 : index
    %3 = vector.load %arg2[%c0_3, %c0_4] : memref<1x32xf32, #tpu.memory_space<vmem>>, vector<1x32xf32>
    %c0_5 = arith.constant 0 : index
    %c0_6 = arith.constant 0 : index
    %4 = vector.load %arg3[%c0_5, %c0_6] : memref<1x32xf32, #tpu.memory_space<vmem>>, vector<1x32xf32>
    %cst = arith.constant dense<0.000000e+00> : vector<16xf32>
    %5 = vector.multi_reduction <add>, %2, %cst [1] : vector<16x32xf32> to vector<16xf32>
    %6 = vector.shape_cast %5 : vector<16xf32> to vector<16x1xf32>
    %cst_7 = arith.constant 3.200000e+01 : f32
    %7 = vector.broadcast %cst_7 : f32 to vector<16x1xf32>
    %8 = arith.divf %6, %7 : vector<16x1xf32>
    %9 = vector.broadcast %8 : vector<16x1xf32> to vector<16x32xf32>
    %10 = arith.subf %2, %9 : vector<16x32xf32>
    %11 = arith.mulf %10, %10 : vector<16x32xf32>
    %cst_8 = arith.constant dense<0.000000e+00> : vector<16xf32>
    %12 = vector.multi_reduction <add>, %11, %cst_8 [1] : vector<16x32xf32> to vector<16xf32>
    %13 = vector.shape_cast %12 : vector<16xf32> to vector<16x1xf32>
    %cst_9 = arith.constant 3.200000e+01 : f32
    %14 = vector.broadcast %cst_9 : f32 to vector<16x1xf32>
    %15 = arith.divf %13, %14 : vector<16x1xf32>
    %16 = vector.broadcast %8 : vector<16x1xf32> to vector<16x32xf32>
    %17 = arith.subf %2, %16 : vector<16x32xf32>
    %cst_10 = arith.constant 9.99999996E-13 : f32
    %18 = vector.broadcast %cst_10 : f32 to vector<16x1xf32>
    %19 = arith.addf %15, %18 : vector<16x1xf32>
    %20 = math.rsqrt %19 : vector<16x1xf32>
    %21 = vector.broadcast %20 : vector<16x1xf32> to vector<16x32xf32>
    %22 = arith.mulf %17, %21 : vector<16x32xf32>
    %23 = vector.broadcast %3 : vector<1x32xf32> to vector<16x32xf32>
    %24 = arith.mulf %22, %23 : vector<16x32xf32>
    %25 = vector.broadcast %4 : vector<1x32xf32> to vector<16x32xf32>
    %26 = arith.addf %24, %25 : vector<16x32xf32>
    %c0_11 = arith.constant 0 : index
    %c0_12 = arith.constant 0 : index
    %c0_13 = arith.constant 0 : index
    %27 = vector.load %arg4[%c0_11, %c0_12, %c0_13] : memref<2x32x96xf32, #tpu.memory_space<vmem>>, vector<1x32x96xf32>
    %28 = vector.shape_cast %27 : vector<1x32x96xf32> to vector<32x96xf32>
    %cst_14 = arith.constant dense<0.000000e+00> : vector<16x96xf32>
    %29 = tpu.matmul %26, %28, %cst_14 {dimension_numbers = #tpu.dot_dimension_numbers<[1], [0], [0], [1], [0, 0, 1, 1], [], []>} : vector<16x32xf32>, vector<32x96xf32>, vector<16x96xf32> -> vector<16x96xf32>
    %c0_15 = arith.constant 0 : index
    %c0_16 = arith.constant 0 : index
    %c0_17 = arith.constant 0 : index
    %30 = vector.load %arg5[%c0_15, %c0_16, %c0_17] : memref<2x1x96xf32, #tpu.memory_space<vmem>>, vector<1x1x96xf32>
    %31 = vector.shape_cast %30 : vector<1x1x96xf32> to vector<1x96xf32>
    %32 = vector.broadcast %31 : vector<1x96xf32> to vector<16x96xf32>
    %33 = arith.addf %29, %32 : vector<16x96xf32>
    %34 = vector.extract_strided_slice %33 {offsets = [0, 0], sizes = [16, 32], strides = [1, 1]} : vector<16x96xf32> to vector<16x32xf32>
    %cst_18 = arith.constant 0.353553385 : f32
    %35 = vector.broadcast %cst_18 : f32 to vector<16x32xf32>
    %36 = arith.mulf %34, %35 : vector<16x32xf32>
    %37 = vector.shape_cast %36 : vector<16x32xf32> to vector<2x8x32xf32>
    %38 = vector.extract_strided_slice %33 {offsets = [0, 32], sizes = [16, 32], strides = [1, 1]} : vector<16x96xf32> to vector<16x32xf32>
    %39 = vector.shape_cast %38 : vector<16x32xf32> to vector<2x8x32xf32>
    %40 = vector.extract_strided_slice %33 {offsets = [0, 64], sizes = [16, 32], strides = [1, 1]} : vector<16x96xf32> to vector<16x32xf32>
    %41 = vector.shape_cast %40 : vector<16x32xf32> to vector<2x8x32xf32>
    %c0_19 = arith.constant 0 : index
    %c0_20 = arith.constant 0 : index
    %c0_21 = arith.constant 0 : index
    %42 = vector.load %arg6[%c0_19, %c0_20, %c0_21] : memref<2x32x32xf32, #tpu.memory_space<vmem>>, vector<1x32x32xf32>
    %43 = vector.shape_cast %42 : vector<1x32x32xf32> to vector<32x32xf32>
    %cst_22 = arith.constant 0.000000e+00 : f32
    %44 = vector.broadcast %cst_22 : f32 to vector<16x32xf32>
    %45 = vector.extract_strided_slice %37 {offsets = [0, 0, 0], sizes = [2, 8, 8], strides = [1, 1, 1]} : vector<2x8x32xf32> to vector<2x8x8xf32>
    %46 = vector.extract_strided_slice %39 {offsets = [0, 0, 0], sizes = [2, 8, 8], strides = [1, 1, 1]} : vector<2x8x32xf32> to vector<2x8x8xf32>
    "tpu.trace_start"() <{level = 10 : i32, message = "bqd,bkd->bqk"}> : () -> ()
    %cst_23 = arith.constant dense<0.000000e+00> : vector<2x8x8xf32>
    %47 = tpu.matmul %45, %46, %cst_23 {dimension_numbers = #tpu.dot_dimension_numbers<[2], [2], [1], [1], [0, 0, 0, 1, 1, 1], [0], [0]>} : vector<2x8x8xf32>, vector<2x8x8xf32>, vector<2x8x8xf32> -> vector<2x8x8xf32>
    "tpu.trace_stop"() : () -> ()
    %48 = vector.broadcast %1 : vector<2x1x8xf32> to vector<2x8x8xf32>
    %49 = arith.addf %47, %48 : vector<2x8x8xf32>
    %cst_24 = arith.constant dense<0xFF800000> : vector<2x8xf32>
    %50 = vector.multi_reduction <maximumf>, %49, %cst_24 [2] : vector<2x8x8xf32> to vector<2x8xf32>
    %51 = vector.shape_cast %50 : vector<2x8xf32> to vector<2x8x1xf32>
    %52 = vector.broadcast %51 : vector<2x8x1xf32> to vector<2x8x8xf32>
    %53 = arith.subf %49, %52 : vector<2x8x8xf32>
    %54 = math.exp %53 : vector<2x8x8xf32>
    %cst_25 = arith.constant dense<0.000000e+00> : vector<2x8xf32>
    %55 = vector.multi_reduction <add>, %54, %cst_25 [2] : vector<2x8x8xf32> to vector<2x8xf32>
    %56 = vector.shape_cast %55 : vector<2x8xf32> to vector<2x8x1xf32>
    %57 = vector.broadcast %56 : vector<2x8x1xf32> to vector<2x8x8xf32>
    %58 = arith.divf %54, %57 : vector<2x8x8xf32>
    %59 = vector.extract_strided_slice %41 {offsets = [0, 0, 0], sizes = [2, 8, 8], strides = [1, 1, 1]} : vector<2x8x32xf32> to vector<2x8x8xf32>
    "tpu.trace_start"() <{level = 10 : i32, message = "bqk,bkd->bqd"}> : () -> ()
    %cst_26 = arith.constant dense<0.000000e+00> : vector<2x8x8xf32>
    %60 = tpu.matmul %58, %59, %cst_26 {dimension_numbers = #tpu.dot_dimension_numbers<[2], [1], [1], [2], [0, 0, 0, 1, 1, 2], [0], [0]>} : vector<2x8x8xf32>, vector<2x8x8xf32>, vector<2x8x8xf32> -> vector<2x8x8xf32>
    "tpu.trace_stop"() : () -> ()
    %61 = vector.shape_cast %60 : vector<2x8x8xf32> to vector<16x8xf32>
    %62 = vector.extract_strided_slice %43 {offsets = [0, 0], sizes = [8, 32], strides = [1, 1]} : vector<32x32xf32> to vector<8x32xf32>
    %cst_27 = arith.constant dense<0.000000e+00> : vector<16x32xf32>
    %63 = tpu.matmul %61, %62, %cst_27 {dimension_numbers = #tpu.dot_dimension_numbers<[1], [0], [0], [1], [0, 0, 1, 1], [], []>} : vector<16x8xf32>, vector<8x32xf32>, vector<16x32xf32> -> vector<16x32xf32>
    %64 = arith.addf %44, %63 : vector<16x32xf32>
    %65 = vector.extract_strided_slice %37 {offsets = [0, 0, 8], sizes = [2, 8, 8], strides = [1, 1, 1]} : vector<2x8x32xf32> to vector<2x8x8xf32>
    %66 = vector.extract_strided_slice %39 {offsets = [0, 0, 8], sizes = [2, 8, 8], strides = [1, 1, 1]} : vector<2x8x32xf32> to vector<2x8x8xf32>
    "tpu.trace_start"() <{level = 10 : i32, message = "bqd,bkd->bqk"}> : () -> ()
    %cst_28 = arith.constant dense<0.000000e+00> : vector<2x8x8xf32>
    %67 = tpu.matmul %65, %66, %cst_28 {dimension_numbers = #tpu.dot_dimension_numbers<[2], [2], [1], [1], [0, 0, 0, 1, 1, 1], [0], [0]>} : vector<2x8x8xf32>, vector<2x8x8xf32>, vector<2x8x8xf32> -> vector<2x8x8xf32>
    "tpu.trace_stop"() : () -> ()
    %68 = vector.broadcast %1 : vector<2x1x8xf32> to vector<2x8x8xf32>
    %69 = arith.addf %67, %68 : vector<2x8x8xf32>
    %cst_29 = arith.constant dense<0xFF800000> : vector<2x8xf32>
    %70 = vector.multi_reduction <maximumf>, %69, %cst_29 [2] : vector<2x8x8xf32> to vector<2x8xf32>
    %71 = vector.shape_cast %70 : vector<2x8xf32> to vector<2x8x1xf32>
    %72 = vector.broadcast %71 : vector<2x8x1xf32> to vector<2x8x8xf32>
    %73 = arith.subf %69, %72 : vector<2x8x8xf32>
    %74 = math.exp %73 : vector<2x8x8xf32>
    %cst_30 = arith.constant dense<0.000000e+00> : vector<2x8xf32>
    %75 = vector.multi_reduction <add>, %74, %cst_30 [2] : vector<2x8x8xf32> to vector<2x8xf32>
    %76 = vector.shape_cast %75 : vector<2x8xf32> to vector<2x8x1xf32>
    %77 = vector.broadcast %76 : vector<2x8x1xf32> to vector<2x8x8xf32>
    %78 = arith.divf %74, %77 : vector<2x8x8xf32>
    %79 = vector.extract_strided_slice %41 {offsets = [0, 0, 8], sizes = [2, 8, 8], strides = [1, 1, 1]} : vector<2x8x32xf32> to vector<2x8x8xf32>
    "tpu.trace_start"() <{level = 10 : i32, message = "bqk,bkd->bqd"}> : () -> ()
    %cst_31 = arith.constant dense<0.000000e+00> : vector<2x8x8xf32>
    %80 = tpu.matmul %78, %79, %cst_31 {dimension_numbers = #tpu.dot_dimension_numbers<[2], [1], [1], [2], [0, 0, 0, 1, 1, 2], [0], [0]>} : vector<2x8x8xf32>, vector<2x8x8xf32>, vector<2x8x8xf32> -> vector<2x8x8xf32>
    "tpu.trace_stop"() : () -> ()
    %81 = vector.shape_cast %80 : vector<2x8x8xf32> to vector<16x8xf32>
    %82 = vector.extract_strided_slice %43 {offsets = [8, 0], sizes = [8, 32], strides = [1, 1]} : vector<32x32xf32> to vector<8x32xf32>
    %cst_32 = arith.constant dense<0.000000e+00> : vector<16x32xf32>
    %83 = tpu.matmul %81, %82, %cst_32 {dimension_numbers = #tpu.dot_dimension_numbers<[1], [0], [0], [1], [0, 0, 1, 1], [], []>} : vector<16x8xf32>, vector<8x32xf32>, vector<16x32xf32> -> vector<16x32xf32>
    %84 = arith.addf %64, %83 : vector<16x32xf32>
    %85 = vector.extract_strided_slice %37 {offsets = [0, 0, 16], sizes = [2, 8, 8], strides = [1, 1, 1]} : vector<2x8x32xf32> to vector<2x8x8xf32>
    %86 = vector.extract_strided_slice %39 {offsets = [0, 0, 16], sizes = [2, 8, 8], strides = [1, 1, 1]} : vector<2x8x32xf32> to vector<2x8x8xf32>
    "tpu.trace_start"() <{level = 10 : i32, message = "bqd,bkd->bqk"}> : () -> ()
    %cst_33 = arith.constant dense<0.000000e+00> : vector<2x8x8xf32>
    %87 = tpu.matmul %85, %86, %cst_33 {dimension_numbers = #tpu.dot_dimension_numbers<[2], [2], [1], [1], [0, 0, 0, 1, 1, 1], [0], [0]>} : vector<2x8x8xf32>, vector<2x8x8xf32>, vector<2x8x8xf32> -> vector<2x8x8xf32>
    "tpu.trace_stop"() : () -> ()
    %88 = vector.broadcast %1 : vector<2x1x8xf32> to vector<2x8x8xf32>
    %89 = arith.addf %87, %88 : vector<2x8x8xf32>
    %cst_34 = arith.constant dense<0xFF800000> : vector<2x8xf32>
    %90 = vector.multi_reduction <maximumf>, %89, %cst_34 [2] : vector<2x8x8xf32> to vector<2x8xf32>
    %91 = vector.shape_cast %90 : vector<2x8xf32> to vector<2x8x1xf32>
    %92 = vector.broadcast %91 : vector<2x8x1xf32> to vector<2x8x8xf32>
    %93 = arith.subf %89, %92 : vector<2x8x8xf32>
    %94 = math.exp %93 : vector<2x8x8xf32>
    %cst_35 = arith.constant dense<0.000000e+00> : vector<2x8xf32>
    %95 = vector.multi_reduction <add>, %94, %cst_35 [2] : vector<2x8x8xf32> to vector<2x8xf32>
    %96 = vector.shape_cast %95 : vector<2x8xf32> to vector<2x8x1xf32>
    %97 = vector.broadcast %96 : vector<2x8x1xf32> to vector<2x8x8xf32>
    %98 = arith.divf %94, %97 : vector<2x8x8xf32>
    %99 = vector.extract_strided_slice %41 {offsets = [0, 0, 16], sizes = [2, 8, 8], strides = [1, 1, 1]} : vector<2x8x32xf32> to vector<2x8x8xf32>
    "tpu.trace_start"() <{level = 10 : i32, message = "bqk,bkd->bqd"}> : () -> ()
    %cst_36 = arith.constant dense<0.000000e+00> : vector<2x8x8xf32>
    %100 = tpu.matmul %98, %99, %cst_36 {dimension_numbers = #tpu.dot_dimension_numbers<[2], [1], [1], [2], [0, 0, 0, 1, 1, 2], [0], [0]>} : vector<2x8x8xf32>, vector<2x8x8xf32>, vector<2x8x8xf32> -> vector<2x8x8xf32>
    "tpu.trace_stop"() : () -> ()
    %101 = vector.shape_cast %100 : vector<2x8x8xf32> to vector<16x8xf32>
    %102 = vector.extract_strided_slice %43 {offsets = [16, 0], sizes = [8, 32], strides = [1, 1]} : vector<32x32xf32> to vector<8x32xf32>
    %cst_37 = arith.constant dense<0.000000e+00> : vector<16x32xf32>
    %103 = tpu.matmul %101, %102, %cst_37 {dimension_numbers = #tpu.dot_dimension_numbers<[1], [0], [0], [1], [0, 0, 1, 1], [], []>} : vector<16x8xf32>, vector<8x32xf32>, vector<16x32xf32> -> vector<16x32xf32>
    %104 = arith.addf %84, %103 : vector<16x32xf32>
    %105 = vector.extract_strided_slice %37 {offsets = [0, 0, 24], sizes = [2, 8, 8], strides = [1, 1, 1]} : vector<2x8x32xf32> to vector<2x8x8xf32>
    %106 = vector.extract_strided_slice %39 {offsets = [0, 0, 24], sizes = [2, 8, 8], strides = [1, 1, 1]} : vector<2x8x32xf32> to vector<2x8x8xf32>
    "tpu.trace_start"() <{level = 10 : i32, message = "bqd,bkd->bqk"}> : () -> ()
    %cst_38 = arith.constant dense<0.000000e+00> : vector<2x8x8xf32>
    %107 = tpu.matmul %105, %106, %cst_38 {dimension_numbers = #tpu.dot_dimension_numbers<[2], [2], [1], [1], [0, 0, 0, 1, 1, 1], [0], [0]>} : vector<2x8x8xf32>, vector<2x8x8xf32>, vector<2x8x8xf32> -> vector<2x8x8xf32>
    "tpu.trace_stop"() : () -> ()
    %108 = vector.broadcast %1 : vector<2x1x8xf32> to vector<2x8x8xf32>
    %109 = arith.addf %107, %108 : vector<2x8x8xf32>
    %cst_39 = arith.constant dense<0xFF800000> : vector<2x8xf32>
    %110 = vector.multi_reduction <maximumf>, %109, %cst_39 [2] : vector<2x8x8xf32> to vector<2x8xf32>
    %111 = vector.shape_cast %110 : vector<2x8xf32> to vector<2x8x1xf32>
    %112 = vector.broadcast %111 : vector<2x8x1xf32> to vector<2x8x8xf32>
    %113 = arith.subf %109, %112 : vector<2x8x8xf32>
    %114 = math.exp %113 : vector<2x8x8xf32>
    %cst_40 = arith.constant dense<0.000000e+00> : vector<2x8xf32>
    %115 = vector.multi_reduction <add>, %114, %cst_40 [2] : vector<2x8x8xf32> to vector<2x8xf32>
    %116 = vector.shape_cast %115 : vector<2x8xf32> to vector<2x8x1xf32>
    %117 = vector.broadcast %116 : vector<2x8x1xf32> to vector<2x8x8xf32>
    %118 = arith.divf %114, %117 : vector<2x8x8xf32>
    %119 = vector.extract_strided_slice %41 {offsets = [0, 0, 24], sizes = [2, 8, 8], strides = [1, 1, 1]} : vector<2x8x32xf32> to vector<2x8x8xf32>
    "tpu.trace_start"() <{level = 10 : i32, message = "bqk,bkd->bqd"}> : () -> ()
    %cst_41 = arith.constant dense<0.000000e+00> : vector<2x8x8xf32>
    %120 = tpu.matmul %118, %119, %cst_41 {dimension_numbers = #tpu.dot_dimension_numbers<[2], [1], [1], [2], [0, 0, 0, 1, 1, 2], [0], [0]>} : vector<2x8x8xf32>, vector<2x8x8xf32>, vector<2x8x8xf32> -> vector<2x8x8xf32>
    "tpu.trace_stop"() : () -> ()
    %121 = vector.shape_cast %120 : vector<2x8x8xf32> to vector<16x8xf32>
    %122 = vector.extract_strided_slice %43 {offsets = [24, 0], sizes = [8, 32], strides = [1, 1]} : vector<32x32xf32> to vector<8x32xf32>
    %cst_42 = arith.constant dense<0.000000e+00> : vector<16x32xf32>
    %123 = tpu.matmul %121, %122, %cst_42 {dimension_numbers = #tpu.dot_dimension_numbers<[1], [0], [0], [1], [0, 0, 1, 1], [], []>} : vector<16x8xf32>, vector<8x32xf32>, vector<16x32xf32> -> vector<16x32xf32>
    %124 = arith.addf %104, %123 : vector<16x32xf32>
    %c0_43 = arith.constant 0 : index
    %c0_44 = arith.constant 0 : index
    %c0_45 = arith.constant 0 : index
    %125 = vector.load %arg7[%c0_43, %c0_44, %c0_45] : memref<2x1x32xf32, #tpu.memory_space<vmem>>, vector<1x1x32xf32>
    %126 = vector.shape_cast %125 : vector<1x1x32xf32> to vector<1x32xf32>
    %127 = vector.broadcast %126 : vector<1x32xf32> to vector<16x32xf32>
    %128 = arith.addf %124, %127 : vector<16x32xf32>
    %129 = arith.addf %128, %26 : vector<16x32xf32>
    %c0_46 = arith.constant 0 : index
    %c0_47 = arith.constant 0 : index
    %c0_48 = arith.constant 0 : index
    %130 = vector.load %arg8[%c0_46, %c0_47, %c0_48] : memref<2x1x32xf32, #tpu.memory_space<vmem>>, vector<1x1x32xf32>
    %131 = vector.shape_cast %130 : vector<1x1x32xf32> to vector<1x32xf32>
    %c0_49 = arith.constant 0 : index
    %c0_50 = arith.constant 0 : index
    %c0_51 = arith.constant 0 : index
    %132 = vector.load %arg9[%c0_49, %c0_50, %c0_51] : memref<2x1x32xf32, #tpu.memory_space<vmem>>, vector<1x1x32xf32>
    %133 = vector.shape_cast %132 : vector<1x1x32xf32> to vector<1x32xf32>
    %cst_52 = arith.constant dense<0.000000e+00> : vector<16xf32>
    %134 = vector.multi_reduction <add>, %129, %cst_52 [1] : vector<16x32xf32> to vector<16xf32>
    %135 = vector.shape_cast %134 : vector<16xf32> to vector<16x1xf32>
    %cst_53 = arith.constant 3.200000e+01 : f32
    %136 = vector.broadcast %cst_53 : f32 to vector<16x1xf32>
    %137 = arith.divf %135, %136 : vector<16x1xf32>
    %138 = vector.broadcast %137 : vector<16x1xf32> to vector<16x32xf32>
    %139 = arith.subf %129, %138 : vector<16x32xf32>
    %140 = arith.mulf %139, %139 : vector<16x32xf32>
    %cst_54 = arith.constant dense<0.000000e+00> : vector<16xf32>
    %141 = vector.multi_reduction <add>, %140, %cst_54 [1] : vector<16x32xf32> to vector<16xf32>
    %142 = vector.shape_cast %141 : vector<16xf32> to vector<16x1xf32>
    %cst_55 = arith.constant 3.200000e+01 : f32
    %143 = vector.broadcast %cst_55 : f32 to vector<16x1xf32>
    %144 = arith.divf %142, %143 : vector<16x1xf32>
    %145 = vector.broadcast %137 : vector<16x1xf32> to vector<16x32xf32>
    %146 = arith.subf %129, %145 : vector<16x32xf32>
    %cst_56 = arith.constant 9.99999996E-13 : f32
    %147 = vector.broadcast %cst_56 : f32 to vector<16x1xf32>
    %148 = arith.addf %144, %147 : vector<16x1xf32>
    %149 = math.rsqrt %148 : vector<16x1xf32>
    %150 = vector.broadcast %149 : vector<16x1xf32> to vector<16x32xf32>
    %151 = arith.mulf %146, %150 : vector<16x32xf32>
    %152 = vector.broadcast %131 : vector<1x32xf32> to vector<16x32xf32>
    %153 = arith.mulf %151, %152 : vector<16x32xf32>
    %154 = vector.broadcast %133 : vector<1x32xf32> to vector<16x32xf32>
    %155 = arith.addf %153, %154 : vector<16x32xf32>
    %c0_57 = arith.constant 0 : index
    %c0_58 = arith.constant 0 : index
    %c0_59 = arith.constant 0 : index
    %156 = vector.load %arg10[%c0_57, %c0_58, %c0_59] : memref<2x32x128xf32, #tpu.memory_space<vmem>>, vector<1x32x128xf32>
    %157 = vector.shape_cast %156 : vector<1x32x128xf32> to vector<32x128xf32>
    %cst_60 = arith.constant dense<0.000000e+00> : vector<16x128xf32>
    %158 = tpu.matmul %155, %157, %cst_60 {dimension_numbers = #tpu.dot_dimension_numbers<[1], [0], [0], [1], [0, 0, 1, 1], [], []>} : vector<16x32xf32>, vector<32x128xf32>, vector<16x128xf32> -> vector<16x128xf32>
    %c0_61 = arith.constant 0 : index
    %c0_62 = arith.constant 0 : index
    %c0_63 = arith.constant 0 : index
    %159 = vector.load %arg11[%c0_61, %c0_62, %c0_63] : memref<2x1x128xf32, #tpu.memory_space<vmem>>, vector<1x1x128xf32>
    %160 = vector.shape_cast %159 : vector<1x1x128xf32> to vector<1x128xf32>
    %161 = vector.broadcast %160 : vector<1x128xf32> to vector<16x128xf32>
    %162 = arith.addf %158, %161 : vector<16x128xf32>
    %cst_64 = arith.constant 5.000000e-01 : f32
    %163 = vector.broadcast %cst_64 : f32 to vector<16x128xf32>
    %164 = arith.mulf %163, %162 : vector<16x128xf32>
    %cst_65 = arith.constant 4.471500e-02 : f32
    %165 = vector.broadcast %cst_65 : f32 to vector<16x128xf32>
    %166 = arith.mulf %165, %162 : vector<16x128xf32>
    %167 = arith.mulf %166, %162 : vector<16x128xf32>
    %168 = arith.mulf %167, %162 : vector<16x128xf32>
    %169 = arith.addf %162, %168 : vector<16x128xf32>
    %cst_66 = arith.constant 0.797884583 : f32
    %170 = vector.broadcast %cst_66 : f32 to vector<16x128xf32>
    %171 = arith.mulf %170, %169 : vector<16x128xf32>
    %172 = math.tanh %171 : vector<16x128xf32>
    %cst_67 = arith.constant 1.000000e+00 : f32
    %173 = vector.broadcast %cst_67 : f32 to vector<16x128xf32>
    %174 = arith.addf %173, %172 : vector<16x128xf32>
    %175 = arith.mulf %164, %174 : vector<16x128xf32>
    %c0_68 = arith.constant 0 : index
    %c0_69 = arith.constant 0 : index
    %c0_70 = arith.constant 0 : index
    %176 = vector.load %arg12[%c0_68, %c0_69, %c0_70] : memref<2x128x32xf32, #tpu.memory_space<vmem>>, vector<1x128x32xf32>
    %177 = vector.shape_cast %176 : vector<1x128x32xf32> to vector<128x32xf32>
    %cst_71 = arith.constant dense<0.000000e+00> : vector<16x32xf32>
    %178 = tpu.matmul %175, %177, %cst_71 {dimension_numbers = #tpu.dot_dimension_numbers<[1], [0], [0], [1], [0, 0, 1, 1], [], []>} : vector<16x128xf32>, vector<128x32xf32>, vector<16x32xf32> -> vector<16x32xf32>
    %c0_72 = arith.constant 0 : index
    %c0_73 = arith.constant 0 : index
    %c0_74 = arith.constant 0 : index
    %179 = vector.load %arg13[%c0_72, %c0_73, %c0_74] : memref<2x1x32xf32, #tpu.memory_space<vmem>>, vector<1x1x32xf32>
    %180 = vector.shape_cast %179 : vector<1x1x32xf32> to vector<1x32xf32>
    %181 = vector.broadcast %180 : vector<1x32xf32> to vector<16x32xf32>
    %182 = arith.addf %178, %181 : vector<16x32xf32>
    %183 = arith.addf %182, %155 : vector<16x32xf32>
    %c0_75 = arith.constant 0 : index
    %c0_76 = arith.constant 0 : index
    %c0_77 = arith.constant 0 : index
    %184 = vector.load %arg14[%c0_75, %c0_76, %c0_77] : memref<2x1x32xf32, #tpu.memory_space<vmem>>, vector<1x1x32xf32>
    %185 = vector.shape_cast %184 : vector<1x1x32xf32> to vector<1x32xf32>
    %c0_78 = arith.constant 0 : index
    %c0_79 = arith.constant 0 : index
    %c0_80 = arith.constant 0 : index
    %186 = vector.load %arg15[%c0_78, %c0_79, %c0_80] : memref<2x1x32xf32, #tpu.memory_space<vmem>>, vector<1x1x32xf32>
    %187 = vector.shape_cast %186 : vector<1x1x32xf32> to vector<1x32xf32>
    %cst_81 = arith.constant dense<0.000000e+00> : vector<16xf32>
    %188 = vector.multi_reduction <add>, %183, %cst_81 [1] : vector<16x32xf32> to vector<16xf32>
    %189 = vector.shape_cast %188 : vector<16xf32> to vector<16x1xf32>
    %cst_82 = arith.constant 3.200000e+01 : f32
    %190 = vector.broadcast %cst_82 : f32 to vector<16x1xf32>
    %191 = arith.divf %189, %190 : vector<16x1xf32>
    %192 = vector.broadcast %191 : vector<16x1xf32> to vector<16x32xf32>
    %193 = arith.subf %183, %192 : vector<16x32xf32>
    %194 = arith.mulf %193, %193 : vector<16x32xf32>
    %cst_83 = arith.constant dense<0.000000e+00> : vector<16xf32>
    %195 = vector.multi_reduction <add>, %194, %cst_83 [1] : vector<16x32xf32> to vector<16xf32>
    %196 = vector.shape_cast %195 : vector<16xf32> to vector<16x1xf32>
    %cst_84 = arith.constant 3.200000e+01 : f32
    %197 = vector.broadcast %cst_84 : f32 to vector<16x1xf32>
    %198 = arith.divf %196, %197 : vector<16x1xf32>
    %199 = vector.broadcast %191 : vector<16x1xf32> to vector<16x32xf32>
    %200 = arith.subf %183, %199 : vector<16x32xf32>
    %cst_85 = arith.constant 9.99999996E-13 : f32
    %201 = vector.broadcast %cst_85 : f32 to vector<16x1xf32>
    %202 = arith.addf %198, %201 : vector<16x1xf32>
    %203 = math.rsqrt %202 : vector<16x1xf32>
    %204 = vector.broadcast %203 : vector<16x1xf32> to vector<16x32xf32>
    %205 = arith.mulf %200, %204 : vector<16x32xf32>
    %206 = vector.broadcast %185 : vector<1x32xf32> to vector<16x32xf32>
    %207 = arith.mulf %205, %206 : vector<16x32xf32>
    %208 = vector.broadcast %187 : vector<1x32xf32> to vector<16x32xf32>
    %209 = arith.addf %207, %208 : vector<16x32xf32>
    %c1 = arith.constant 1 : index
    %c0_86 = arith.constant 0 : index
    %c0_87 = arith.constant 0 : index
    %210 = vector.load %arg4[%c1, %c0_86, %c0_87] : memref<2x32x96xf32, #tpu.memory_space<vmem>>, vector<1x32x96xf32>
    %211 = vector.shape_cast %210 : vector<1x32x96xf32> to vector<32x96xf32>
    %cst_88 = arith.constant dense<0.000000e+00> : vector<16x96xf32>
    %212 = tpu.matmul %209, %211, %cst_88 {dimension_numbers = #tpu.dot_dimension_numbers<[1], [0], [0], [1], [0, 0, 1, 1], [], []>} : vector<16x32xf32>, vector<32x96xf32>, vector<16x96xf32> -> vector<16x96xf32>
    %c1_89 = arith.constant 1 : index
    %c0_90 = arith.constant 0 : index
    %c0_91 = arith.constant 0 : index
    %213 = vector.load %arg5[%c1_89, %c0_90, %c0_91] : memref<2x1x96xf32, #tpu.memory_space<vmem>>, vector<1x1x96xf32>
    %214 = vector.shape_cast %213 : vector<1x1x96xf32> to vector<1x96xf32>
    %215 = vector.broadcast %214 : vector<1x96xf32> to vector<16x96xf32>
    %216 = arith.addf %212, %215 : vector<16x96xf32>
    %217 = vector.extract_strided_slice %216 {offsets = [0, 0], sizes = [16, 32], strides = [1, 1]} : vector<16x96xf32> to vector<16x32xf32>
    %cst_92 = arith.constant 0.353553385 : f32
    %218 = vector.broadcast %cst_92 : f32 to vector<16x32xf32>
    %219 = arith.mulf %217, %218 : vector<16x32xf32>
    %220 = vector.shape_cast %219 : vector<16x32xf32> to vector<2x8x32xf32>
    %221 = vector.extract_strided_slice %216 {offsets = [0, 32], sizes = [16, 32], strides = [1, 1]} : vector<16x96xf32> to vector<16x32xf32>
    %222 = vector.shape_cast %221 : vector<16x32xf32> to vector<2x8x32xf32>
    %223 = vector.extract_strided_slice %216 {offsets = [0, 64], sizes = [16, 32], strides = [1, 1]} : vector<16x96xf32> to vector<16x32xf32>
    %224 = vector.shape_cast %223 : vector<16x32xf32> to vector<2x8x32xf32>
    %c1_93 = arith.constant 1 : index
    %c0_94 = arith.constant 0 : index
    %c0_95 = arith.constant 0 : index
    %225 = vector.load %arg6[%c1_93, %c0_94, %c0_95] : memref<2x32x32xf32, #tpu.memory_space<vmem>>, vector<1x32x32xf32>
    %226 = vector.shape_cast %225 : vector<1x32x32xf32> to vector<32x32xf32>
    %cst_96 = arith.constant 0.000000e+00 : f32
    %227 = vector.broadcast %cst_96 : f32 to vector<16x32xf32>
    %228 = vector.extract_strided_slice %220 {offsets = [0, 0, 0], sizes = [2, 8, 8], strides = [1, 1, 1]} : vector<2x8x32xf32> to vector<2x8x8xf32>
    %229 = vector.extract_strided_slice %222 {offsets = [0, 0, 0], sizes = [2, 8, 8], strides = [1, 1, 1]} : vector<2x8x32xf32> to vector<2x8x8xf32>
    "tpu.trace_start"() <{level = 10 : i32, message = "bqd,bkd->bqk"}> : () -> ()
    %cst_97 = arith.constant dense<0.000000e+00> : vector<2x8x8xf32>
    %230 = tpu.matmul %228, %229, %cst_97 {dimension_numbers = #tpu.dot_dimension_numbers<[2], [2], [1], [1], [0, 0, 0, 1, 1, 1], [0], [0]>} : vector<2x8x8xf32>, vector<2x8x8xf32>, vector<2x8x8xf32> -> vector<2x8x8xf32>
    "tpu.trace_stop"() : () -> ()
    %231 = vector.broadcast %1 : vector<2x1x8xf32> to vector<2x8x8xf32>
    %232 = arith.addf %230, %231 : vector<2x8x8xf32>
    %cst_98 = arith.constant dense<0xFF800000> : vector<2x8xf32>
    %233 = vector.multi_reduction <maximumf>, %232, %cst_98 [2] : vector<2x8x8xf32> to vector<2x8xf32>
    %234 = vector.shape_cast %233 : vector<2x8xf32> to vector<2x8x1xf32>
    %235 = vector.broadcast %234 : vector<2x8x1xf32> to vector<2x8x8xf32>
    %236 = arith.subf %232, %235 : vector<2x8x8xf32>
    %237 = math.exp %236 : vector<2x8x8xf32>
    %cst_99 = arith.constant dense<0.000000e+00> : vector<2x8xf32>
    %238 = vector.multi_reduction <add>, %237, %cst_99 [2] : vector<2x8x8xf32> to vector<2x8xf32>
    %239 = vector.shape_cast %238 : vector<2x8xf32> to vector<2x8x1xf32>
    %240 = vector.broadcast %239 : vector<2x8x1xf32> to vector<2x8x8xf32>
    %241 = arith.divf %237, %240 : vector<2x8x8xf32>
    %242 = vector.extract_strided_slice %224 {offsets = [0, 0, 0], sizes = [2, 8, 8], strides = [1, 1, 1]} : vector<2x8x32xf32> to vector<2x8x8xf32>
    "tpu.trace_start"() <{level = 10 : i32, message = "bqk,bkd->bqd"}> : () -> ()
    %cst_100 = arith.constant dense<0.000000e+00> : vector<2x8x8xf32>
    %243 = tpu.matmul %241, %242, %cst_100 {dimension_numbers = #tpu.dot_dimension_numbers<[2], [1], [1], [2], [0, 0, 0, 1, 1, 2], [0], [0]>} : vector<2x8x8xf32>, vector<2x8x8xf32>, vector<2x8x8xf32> -> vector<2x8x8xf32>
    "tpu.trace_stop"() : () -> ()
    %244 = vector.shape_cast %243 : vector<2x8x8xf32> to vector<16x8xf32>
    %245 = vector.extract_strided_slice %226 {offsets = [0, 0], sizes = [8, 32], strides = [1, 1]} : vector<32x32xf32> to vector<8x32xf32>
    %cst_101 = arith.constant dense<0.000000e+00> : vector<16x32xf32>
    %246 = tpu.matmul %244, %245, %cst_101 {dimension_numbers = #tpu.dot_dimension_numbers<[1], [0], [0], [1], [0, 0, 1, 1], [], []>} : vector<16x8xf32>, vector<8x32xf32>, vector<16x32xf32> -> vector<16x32xf32>
    %247 = arith.addf %227, %246 : vector<16x32xf32>
    %248 = vector.extract_strided_slice %220 {offsets = [0, 0, 8], sizes = [2, 8, 8], strides = [1, 1, 1]} : vector<2x8x32xf32> to vector<2x8x8xf32>
    %249 = vector.extract_strided_slice %222 {offsets = [0, 0, 8], sizes = [2, 8, 8], strides = [1, 1, 1]} : vector<2x8x32xf32> to vector<2x8x8xf32>
    "tpu.trace_start"() <{level = 10 : i32, message = "bqd,bkd->bqk"}> : () -> ()
    %cst_102 = arith.constant dense<0.000000e+00> : vector<2x8x8xf32>
    %250 = tpu.matmul %248, %249, %cst_102 {dimension_numbers = #tpu.dot_dimension_numbers<[2], [2], [1], [1], [0, 0, 0, 1, 1, 1], [0], [0]>} : vector<2x8x8xf32>, vector<2x8x8xf32>, vector<2x8x8xf32> -> vector<2x8x8xf32>
    "tpu.trace_stop"() : () -> ()
    %251 = vector.broadcast %1 : vector<2x1x8xf32> to vector<2x8x8xf32>
    %252 = arith.addf %250, %251 : vector<2x8x8xf32>
    %cst_103 = arith.constant dense<0xFF800000> : vector<2x8xf32>
    %253 = vector.multi_reduction <maximumf>, %252, %cst_103 [2] : vector<2x8x8xf32> to vector<2x8xf32>
    %254 = vector.shape_cast %253 : vector<2x8xf32> to vector<2x8x1xf32>
    %255 = vector.broadcast %254 : vector<2x8x1xf32> to vector<2x8x8xf32>
    %256 = arith.subf %252, %255 : vector<2x8x8xf32>
    %257 = math.exp %256 : vector<2x8x8xf32>
    %cst_104 = arith.constant dense<0.000000e+00> : vector<2x8xf32>
    %258 = vector.multi_reduction <add>, %257, %cst_104 [2] : vector<2x8x8xf32> to vector<2x8xf32>
    %259 = vector.shape_cast %258 : vector<2x8xf32> to vector<2x8x1xf32>
    %260 = vector.broadcast %259 : vector<2x8x1xf32> to vector<2x8x8xf32>
    %261 = arith.divf %257, %260 : vector<2x8x8xf32>
    %262 = vector.extract_strided_slice %224 {offsets = [0, 0, 8], sizes = [2, 8, 8], strides = [1, 1, 1]} : vector<2x8x32xf32> to vector<2x8x8xf32>
    "tpu.trace_start"() <{level = 10 : i32, message = "bqk,bkd->bqd"}> : () -> ()
    %cst_105 = arith.constant dense<0.000000e+00> : vector<2x8x8xf32>
    %263 = tpu.matmul %261, %262, %cst_105 {dimension_numbers = #tpu.dot_dimension_numbers<[2], [1], [1], [2], [0, 0, 0, 1, 1, 2], [0], [0]>} : vector<2x8x8xf32>, vector<2x8x8xf32>, vector<2x8x8xf32> -> vector<2x8x8xf32>
    "tpu.trace_stop"() : () -> ()
    %264 = vector.shape_cast %263 : vector<2x8x8xf32> to vector<16x8xf32>
    %265 = vector.extract_strided_slice %226 {offsets = [8, 0], sizes = [8, 32], strides = [1, 1]} : vector<32x32xf32> to vector<8x32xf32>
    %cst_106 = arith.constant dense<0.000000e+00> : vector<16x32xf32>
    %266 = tpu.matmul %264, %265, %cst_106 {dimension_numbers = #tpu.dot_dimension_numbers<[1], [0], [0], [1], [0, 0, 1, 1], [], []>} : vector<16x8xf32>, vector<8x32xf32>, vector<16x32xf32> -> vector<16x32xf32>
    %267 = arith.addf %247, %266 : vector<16x32xf32>
    %268 = vector.extract_strided_slice %220 {offsets = [0, 0, 16], sizes = [2, 8, 8], strides = [1, 1, 1]} : vector<2x8x32xf32> to vector<2x8x8xf32>
    %269 = vector.extract_strided_slice %222 {offsets = [0, 0, 16], sizes = [2, 8, 8], strides = [1, 1, 1]} : vector<2x8x32xf32> to vector<2x8x8xf32>
    "tpu.trace_start"() <{level = 10 : i32, message = "bqd,bkd->bqk"}> : () -> ()
    %cst_107 = arith.constant dense<0.000000e+00> : vector<2x8x8xf32>
    %270 = tpu.matmul %268, %269, %cst_107 {dimension_numbers = #tpu.dot_dimension_numbers<[2], [2], [1], [1], [0, 0, 0, 1, 1, 1], [0], [0]>} : vector<2x8x8xf32>, vector<2x8x8xf32>, vector<2x8x8xf32> -> vector<2x8x8xf32>
    "tpu.trace_stop"() : () -> ()
    %271 = vector.broadcast %1 : vector<2x1x8xf32> to vector<2x8x8xf32>
    %272 = arith.addf %270, %271 : vector<2x8x8xf32>
    %cst_108 = arith.constant dense<0xFF800000> : vector<2x8xf32>
    %273 = vector.multi_reduction <maximumf>, %272, %cst_108 [2] : vector<2x8x8xf32> to vector<2x8xf32>
    %274 = vector.shape_cast %273 : vector<2x8xf32> to vector<2x8x1xf32>
    %275 = vector.broadcast %274 : vector<2x8x1xf32> to vector<2x8x8xf32>
    %276 = arith.subf %272, %275 : vector<2x8x8xf32>
    %277 = math.exp %276 : vector<2x8x8xf32>
    %cst_109 = arith.constant dense<0.000000e+00> : vector<2x8xf32>
    %278 = vector.multi_reduction <add>, %277, %cst_109 [2] : vector<2x8x8xf32> to vector<2x8xf32>
    %279 = vector.shape_cast %278 : vector<2x8xf32> to vector<2x8x1xf32>
    %280 = vector.broadcast %279 : vector<2x8x1xf32> to vector<2x8x8xf32>
    %281 = arith.divf %277, %280 : vector<2x8x8xf32>
    %282 = vector.extract_strided_slice %224 {offsets = [0, 0, 16], sizes = [2, 8, 8], strides = [1, 1, 1]} : vector<2x8x32xf32> to vector<2x8x8xf32>
    "tpu.trace_start"() <{level = 10 : i32, message = "bqk,bkd->bqd"}> : () -> ()
    %cst_110 = arith.constant dense<0.000000e+00> : vector<2x8x8xf32>
    %283 = tpu.matmul %281, %282, %cst_110 {dimension_numbers = #tpu.dot_dimension_numbers<[2], [1], [1], [2], [0, 0, 0, 1, 1, 2], [0], [0]>} : vector<2x8x8xf32>, vector<2x8x8xf32>, vector<2x8x8xf32> -> vector<2x8x8xf32>
    "tpu.trace_stop"() : () -> ()
    %284 = vector.shape_cast %283 : vector<2x8x8xf32> to vector<16x8xf32>
    %285 = vector.extract_strided_slice %226 {offsets = [16, 0], sizes = [8, 32], strides = [1, 1]} : vector<32x32xf32> to vector<8x32xf32>
    %cst_111 = arith.constant dense<0.000000e+00> : vector<16x32xf32>
    %286 = tpu.matmul %284, %285, %cst_111 {dimension_numbers = #tpu.dot_dimension_numbers<[1], [0], [0], [1], [0, 0, 1, 1], [], []>} : vector<16x8xf32>, vector<8x32xf32>, vector<16x32xf32> -> vector<16x32xf32>
    %287 = arith.addf %267, %286 : vector<16x32xf32>
    %288 = vector.extract_strided_slice %220 {offsets = [0, 0, 24], sizes = [2, 8, 8], strides = [1, 1, 1]} : vector<2x8x32xf32> to vector<2x8x8xf32>
    %289 = vector.extract_strided_slice %222 {offsets = [0, 0, 24], sizes = [2, 8, 8], strides = [1, 1, 1]} : vector<2x8x32xf32> to vector<2x8x8xf32>
    "tpu.trace_start"() <{level = 10 : i32, message = "bqd,bkd->bqk"}> : () -> ()
    %cst_112 = arith.constant dense<0.000000e+00> : vector<2x8x8xf32>
    %290 = tpu.matmul %288, %289, %cst_112 {dimension_numbers = #tpu.dot_dimension_numbers<[2], [2], [1], [1], [0, 0, 0, 1, 1, 1], [0], [0]>} : vector<2x8x8xf32>, vector<2x8x8xf32>, vector<2x8x8xf32> -> vector<2x8x8xf32>
    "tpu.trace_stop"() : () -> ()
    %291 = vector.broadcast %1 : vector<2x1x8xf32> to vector<2x8x8xf32>
    %292 = arith.addf %290, %291 : vector<2x8x8xf32>
    %cst_113 = arith.constant dense<0xFF800000> : vector<2x8xf32>
    %293 = vector.multi_reduction <maximumf>, %292, %cst_113 [2] : vector<2x8x8xf32> to vector<2x8xf32>
    %294 = vector.shape_cast %293 : vector<2x8xf32> to vector<2x8x1xf32>
    %295 = vector.broadcast %294 : vector<2x8x1xf32> to vector<2x8x8xf32>
    %296 = arith.subf %292, %295 : vector<2x8x8xf32>
    %297 = math.exp %296 : vector<2x8x8xf32>
    %cst_114 = arith.constant dense<0.000000e+00> : vector<2x8xf32>
    %298 = vector.multi_reduction <add>, %297, %cst_114 [2] : vector<2x8x8xf32> to vector<2x8xf32>
    %299 = vector.shape_cast %298 : vector<2x8xf32> to vector<2x8x1xf32>
    %300 = vector.broadcast %299 : vector<2x8x1xf32> to vector<2x8x8xf32>
    %301 = arith.divf %297, %300 : vector<2x8x8xf32>
    %302 = vector.extract_strided_slice %224 {offsets = [0, 0, 24], sizes = [2, 8, 8], strides = [1, 1, 1]} : vector<2x8x32xf32> to vector<2x8x8xf32>
    "tpu.trace_start"() <{level = 10 : i32, message = "bqk,bkd->bqd"}> : () -> ()
    %cst_115 = arith.constant dense<0.000000e+00> : vector<2x8x8xf32>
    %303 = tpu.matmul %301, %302, %cst_115 {dimension_numbers = #tpu.dot_dimension_numbers<[2], [1], [1], [2], [0, 0, 0, 1, 1, 2], [0], [0]>} : vector<2x8x8xf32>, vector<2x8x8xf32>, vector<2x8x8xf32> -> vector<2x8x8xf32>
    "tpu.trace_stop"() : () -> ()
    %304 = vector.shape_cast %303 : vector<2x8x8xf32> to vector<16x8xf32>
    %305 = vector.extract_strided_slice %226 {offsets = [24, 0], sizes = [8, 32], strides = [1, 1]} : vector<32x32xf32> to vector<8x32xf32>
    %cst_116 = arith.constant dense<0.000000e+00> : vector<16x32xf32>
    %306 = tpu.matmul %304, %305, %cst_116 {dimension_numbers = #tpu.dot_dimension_numbers<[1], [0], [0], [1], [0, 0, 1, 1], [], []>} : vector<16x8xf32>, vector<8x32xf32>, vector<16x32xf32> -> vector<16x32xf32>
    %307 = arith.addf %287, %306 : vector<16x32xf32>
    %c1_117 = arith.constant 1 : index
    %c0_118 = arith.constant 0 : index
    %c0_119 = arith.constant 0 : index
    %308 = vector.load %arg7[%c1_117, %c0_118, %c0_119] : memref<2x1x32xf32, #tpu.memory_space<vmem>>, vector<1x1x32xf32>
    %309 = vector.shape_cast %308 : vector<1x1x32xf32> to vector<1x32xf32>
    %310 = vector.broadcast %309 : vector<1x32xf32> to vector<16x32xf32>
    %311 = arith.addf %307, %310 : vector<16x32xf32>
    %312 = arith.addf %311, %209 : vector<16x32xf32>
    %c1_120 = arith.constant 1 : index
    %c0_121 = arith.constant 0 : index
    %c0_122 = arith.constant 0 : index
    %313 = vector.load %arg8[%c1_120, %c0_121, %c0_122] : memref<2x1x32xf32, #tpu.memory_space<vmem>>, vector<1x1x32xf32>
    %314 = vector.shape_cast %313 : vector<1x1x32xf32> to vector<1x32xf32>
    %c1_123 = arith.constant 1 : index
    %c0_124 = arith.constant 0 : index
    %c0_125 = arith.constant 0 : index
    %315 = vector.load %arg9[%c1_123, %c0_124, %c0_125] : memref<2x1x32xf32, #tpu.memory_space<vmem>>, vector<1x1x32xf32>
    %316 = vector.shape_cast %315 : vector<1x1x32xf32> to vector<1x32xf32>
    %cst_126 = arith.constant dense<0.000000e+00> : vector<16xf32>
    %317 = vector.multi_reduction <add>, %312, %cst_126 [1] : vector<16x32xf32> to vector<16xf32>
    %318 = vector.shape_cast %317 : vector<16xf32> to vector<16x1xf32>
    %cst_127 = arith.constant 3.200000e+01 : f32
    %319 = vector.broadcast %cst_127 : f32 to vector<16x1xf32>
    %320 = arith.divf %318, %319 : vector<16x1xf32>
    %321 = vector.broadcast %320 : vector<16x1xf32> to vector<16x32xf32>
    %322 = arith.subf %312, %321 : vector<16x32xf32>
    %323 = arith.mulf %322, %322 : vector<16x32xf32>
    %cst_128 = arith.constant dense<0.000000e+00> : vector<16xf32>
    %324 = vector.multi_reduction <add>, %323, %cst_128 [1] : vector<16x32xf32> to vector<16xf32>
    %325 = vector.shape_cast %324 : vector<16xf32> to vector<16x1xf32>
    %cst_129 = arith.constant 3.200000e+01 : f32
    %326 = vector.broadcast %cst_129 : f32 to vector<16x1xf32>
    %327 = arith.divf %325, %326 : vector<16x1xf32>
    %328 = vector.broadcast %320 : vector<16x1xf32> to vector<16x32xf32>
    %329 = arith.subf %312, %328 : vector<16x32xf32>
    %cst_130 = arith.constant 9.99999996E-13 : f32
    %330 = vector.broadcast %cst_130 : f32 to vector<16x1xf32>
    %331 = arith.addf %327, %330 : vector<16x1xf32>
    %332 = math.rsqrt %331 : vector<16x1xf32>
    %333 = vector.broadcast %332 : vector<16x1xf32> to vector<16x32xf32>
    %334 = arith.mulf %329, %333 : vector<16x32xf32>
    %335 = vector.broadcast %314 : vector<1x32xf32> to vector<16x32xf32>
    %336 = arith.mulf %334, %335 : vector<16x32xf32>
    %337 = vector.broadcast %316 : vector<1x32xf32> to vector<16x32xf32>
    %338 = arith.addf %336, %337 : vector<16x32xf32>
    %c1_131 = arith.constant 1 : index
    %c0_132 = arith.constant 0 : index
    %c0_133 = arith.constant 0 : index
    %339 = vector.load %arg10[%c1_131, %c0_132, %c0_133] : memref<2x32x128xf32, #tpu.memory_space<vmem>>, vector<1x32x128xf32>
    %340 = vector.shape_cast %339 : vector<1x32x128xf32> to vector<32x128xf32>
    %cst_134 = arith.constant dense<0.000000e+00> : vector<16x128xf32>
    %341 = tpu.matmul %338, %340, %cst_134 {dimension_numbers = #tpu.dot_dimension_numbers<[1], [0], [0], [1], [0, 0, 1, 1], [], []>} : vector<16x32xf32>, vector<32x128xf32>, vector<16x128xf32> -> vector<16x128xf32>
    %c1_135 = arith.constant 1 : index
    %c0_136 = arith.constant 0 : index
    %c0_137 = arith.constant 0 : index
    %342 = vector.load %arg11[%c1_135, %c0_136, %c0_137] : memref<2x1x128xf32, #tpu.memory_space<vmem>>, vector<1x1x128xf32>
    %343 = vector.shape_cast %342 : vector<1x1x128xf32> to vector<1x128xf32>
    %344 = vector.broadcast %343 : vector<1x128xf32> to vector<16x128xf32>
    %345 = arith.addf %341, %344 : vector<16x128xf32>
    %cst_138 = arith.constant 5.000000e-01 : f32
    %346 = vector.broadcast %cst_138 : f32 to vector<16x128xf32>
    %347 = arith.mulf %346, %345 : vector<16x128xf32>
    %cst_139 = arith.constant 4.471500e-02 : f32
    %348 = vector.broadcast %cst_139 : f32 to vector<16x128xf32>
    %349 = arith.mulf %348, %345 : vector<16x128xf32>
    %350 = arith.mulf %349, %345 : vector<16x128xf32>
    %351 = arith.mulf %350, %345 : vector<16x128xf32>
    %352 = arith.addf %345, %351 : vector<16x128xf32>
    %cst_140 = arith.constant 0.797884583 : f32
    %353 = vector.broadcast %cst_140 : f32 to vector<16x128xf32>
    %354 = arith.mulf %353, %352 : vector<16x128xf32>
    %355 = math.tanh %354 : vector<16x128xf32>
    %cst_141 = arith.constant 1.000000e+00 : f32
    %356 = vector.broadcast %cst_141 : f32 to vector<16x128xf32>
    %357 = arith.addf %356, %355 : vector<16x128xf32>
    %358 = arith.mulf %347, %357 : vector<16x128xf32>
    %c1_142 = arith.constant 1 : index
    %c0_143 = arith.constant 0 : index
    %c0_144 = arith.constant 0 : index
    %359 = vector.load %arg12[%c1_142, %c0_143, %c0_144] : memref<2x128x32xf32, #tpu.memory_space<vmem>>, vector<1x128x32xf32>
    %360 = vector.shape_cast %359 : vector<1x128x32xf32> to vector<128x32xf32>
    %cst_145 = arith.constant dense<0.000000e+00> : vector<16x32xf32>
    %361 = tpu.matmul %358, %360, %cst_145 {dimension_numbers = #tpu.dot_dimension_numbers<[1], [0], [0], [1], [0, 0, 1, 1], [], []>} : vector<16x128xf32>, vector<128x32xf32>, vector<16x32xf32> -> vector<16x32xf32>
    %c1_146 = arith.constant 1 : index
    %c0_147 = arith.constant 0 : index
    %c0_148 = arith.constant 0 : index
    %362 = vector.load %arg13[%c1_146, %c0_147, %c0_148] : memref<2x1x32xf32, #tpu.memory_space<vmem>>, vector<1x1x32xf32>
    %363 = vector.shape_cast %362 : vector<1x1x32xf32> to vector<1x32xf32>
    %364 = vector.broadcast %363 : vector<1x32xf32> to vector<16x32xf32>
    %365 = arith.addf %361, %364 : vector<16x32xf32>
    %366 = arith.addf %365, %338 : vector<16x32xf32>
    %c1_149 = arith.constant 1 : index
    %c0_150 = arith.constant 0 : index
    %c0_151 = arith.constant 0 : index
    %367 = vector.load %arg14[%c1_149, %c0_150, %c0_151] : memref<2x1x32xf32, #tpu.memory_space<vmem>>, vector<1x1x32xf32>
    %368 = vector.shape_cast %367 : vector<1x1x32xf32> to vector<1x32xf32>
    %c1_152 = arith.constant 1 : index
    %c0_153 = arith.constant 0 : index
    %c0_154 = arith.constant 0 : index
    %369 = vector.load %arg15[%c1_152, %c0_153, %c0_154] : memref<2x1x32xf32, #tpu.memory_space<vmem>>, vector<1x1x32xf32>
    %370 = vector.shape_cast %369 : vector<1x1x32xf32> to vector<1x32xf32>
    %cst_155 = arith.constant dense<0.000000e+00> : vector<16xf32>
    %371 = vector.multi_reduction <add>, %366, %cst_155 [1] : vector<16x32xf32> to vector<16xf32>
    %372 = vector.shape_cast %371 : vector<16xf32> to vector<16x1xf32>
    %cst_156 = arith.constant 3.200000e+01 : f32
    %373 = vector.broadcast %cst_156 : f32 to vector<16x1xf32>
    %374 = arith.divf %372, %373 : vector<16x1xf32>
    %375 = vector.broadcast %374 : vector<16x1xf32> to vector<16x32xf32>
    %376 = arith.subf %366, %375 : vector<16x32xf32>
    %377 = arith.mulf %376, %376 : vector<16x32xf32>
    %cst_157 = arith.constant dense<0.000000e+00> : vector<16xf32>
    %378 = vector.multi_reduction <add>, %377, %cst_157 [1] : vector<16x32xf32> to vector<16xf32>
    %379 = vector.shape_cast %378 : vector<16xf32> to vector<16x1xf32>
    %cst_158 = arith.constant 3.200000e+01 : f32
    %380 = vector.broadcast %cst_158 : f32 to vector<16x1xf32>
    %381 = arith.divf %379, %380 : vector<16x1xf32>
    %382 = vector.broadcast %374 : vector<16x1xf32> to vector<16x32xf32>
    %383 = arith.subf %366, %382 : vector<16x32xf32>
    %cst_159 = arith.constant 9.99999996E-13 : f32
    %384 = vector.broadcast %cst_159 : f32 to vector<16x1xf32>
    %385 = arith.addf %381, %384 : vector<16x1xf32>
    %386 = math.rsqrt %385 : vector<16x1xf32>
    %387 = vector.broadcast %386 : vector<16x1xf32> to vector<16x32xf32>
    %388 = arith.mulf %383, %387 : vector<16x32xf32>
    %389 = vector.broadcast %368 : vector<1x32xf32> to vector<16x32xf32>
    %390 = arith.mulf %388, %389 : vector<16x32xf32>
    %391 = vector.broadcast %370 : vector<1x32xf32> to vector<16x32xf32>
    %392 = arith.addf %390, %391 : vector<16x32xf32>
    %393 = vector.shape_cast %392 : vector<16x32xf32> to vector<2x8x32xf32>
    %394 = vector.extract_strided_slice %393 {offsets = [0, 0, 0], sizes = [2, 1, 32], strides = [1, 1, 1]} : vector<2x8x32xf32> to vector<2x1x32xf32>
    %395 = vector.shape_cast %394 : vector<2x1x32xf32> to vector<2x32xf32>
    %c0_160 = arith.constant 0 : index
    %c0_161 = arith.constant 0 : index
    %396 = vector.load %arg19[%c0_160, %c0_161] : memref<2x32xf32, #tpu.memory_space<vmem>>, vector<2x32xf32>
    tpu.vector_store %arg19[%c0_160, %c0_161], %395 {strides = array<i32>} : memref<2x32xf32, #tpu.memory_space<vmem>>, vector<2x32xf32>,
    %c0_162 = arith.constant 0 : index
    %c0_163 = arith.constant 0 : index
    %397 = vector.load %arg16[%c0_162, %c0_163] : memref<32x128xf32, #tpu.memory_space<vmem>>, vector<32x128xf32>
    %cst_164 = arith.constant dense<0.000000e+00> : vector<2x128xf32>
    %398 = tpu.matmul %395, %397, %cst_164 {dimension_numbers = #tpu.dot_dimension_numbers<[1], [0], [0], [1], [0, 0, 1, 1], [], []>} : vector<2x32xf32>, vector<32x128xf32>, vector<2x128xf32> -> vector<2x128xf32>
    %c0_165 = arith.constant 0 : index
    %c0_166 = arith.constant 0 : index
    %399 = vector.load %arg17[%c0_165, %c0_166] : memref<1x128xf32, #tpu.memory_space<vmem>>, vector<1x128xf32>
    %400 = vector.broadcast %399 : vector<1x128xf32> to vector<2x128xf32>
    %401 = arith.addf %398, %400 : vector<2x128xf32>
    %c0_167 = arith.constant 0 : index
    %c0_168 = arith.constant 0 : index
    %402 = vector.load %arg18[%c0_167, %c0_168] : memref<2x128xf32, #tpu.memory_space<vmem>>, vector<2x128xf32>
    tpu.vector_store %arg18[%c0_167, %c0_168], %401 {strides = array<i32>} : memref<2x128xf32, #tpu.memory_space<vmem>>, vector<2x128xf32>,
    return
  }
}

</mosaic_0001>

<bundles_post_ra>
// kernel: distilbert_classifier.1
= control target key start
LH: loop header
LB: loop body
LE: loop exit
PB: predicated region body
PF: predicated region fallthrough
CT: control target
= control target key end

     0   :  { %s6052_s0 = inlined_call_operand.vmem [shape: f32[16,32], index: 0, kind: input, shape index: {}]   ;;  %s6053_s1 = inlined_call_operand.vmem [shape: f32[2,8], index: 1, kind: input, shape index: {}]   ;;  %s6054_s2 = inlined_call_operand.vmem [shape: f32[1,32], index: 2, kind: input, shape index: {}]   ;;  %s6055_s3 = inlined_call_operand.vmem [shape: f32[1,32], index: 3, kind: input, shape index: {}]   ;;  %s6056_s4 = inlined_call_operand.vmem [shape: f32[2,32,96], index: 4, kind: input, shape index: {}]   ;;  %s6057_s5 = inlined_call_operand.vmem [shape: f32[2,1,96], index: 5, kind: input, shape index: {}]   ;;  %s6058_s6 = inlined_call_operand.vmem [shape: f32[2,32,32], index: 6, kind: input, shape index: {}]   ;;  %s6059_s7 = inlined_call_operand.vmem [shape: f32[2,1,32], index: 7, kind: input, shape index: {}]   ;;  %s6060_s8 = inlined_call_operand.vmem [shape: f32[2,1,32], index: 8, kind: input, shape index: {}]   ;;  %s6061_s9 = inlined_call_operand.vmem [shape: f32[2,1,32], index: 9, kind: input, shape index: {}]   ;;  %s6062_s10 = inlined_call_operand.vmem [shape: f32[2,32,128], index: 10, kind: input, shape index: {}]   ;;  %s6063_s11 = inlined_call_operand.vmem [shape: f32[2,1,128], index: 11, kind: input, shape index: {}]   ;;  %s6064_s12 = inlined_call_operand.vmem [shape: f32[2,128,32], index: 12, kind: input, shape index: {}]   ;;  %s6065_s13 = inlined_call_operand.vmem [shape: f32[2,1,32], index: 13, kind: input, shape index: {}]   ;;  %s6066_s14 = inlined_call_operand.vmem [shape: f32[2,1,32], index: 14, kind: input, shape index: {}]   ;;  %s6067_s15 = inlined_call_operand.vmem [shape: f32[2,1,32], index: 15, kind: input, shape index: {}]   ;;  %s6068_s16 = inlined_call_operand.vmem [shape: f32[32,128], index: 16, kind: input, shape index: {}]   ;;  %s6069_s17 = inlined_call_operand.vmem [shape: f32[1,128], index: 17, kind: input, shape index: {}]   ;;  %s6070_s18 = inlined_call_operand.hbm [shape: f32[2,128], index: 18, kind: output, shape index: {0}]   ;;  %s6071_s19 = inlined_call_operand.hbm [shape: f32[2,32], index: 19, kind: output, shape index: {1}]  }
   0x1   :  { %6085 = sst [smem:[#allocation8_spill]] %s6052_s0 }
   0x2   :  { %6086 = sst [smem:[#allocation9_spill]] %s6053_s1 }
   0x3   :  { %6087 = sst [smem:[#allocation10_spill]] %s6054_s2 }
   0x4   :  { %6088 = sst [smem:[#allocation11_spill]] %s6055_s3 }
   0x5   :  { %25 = vsyncpa [#allocation3], 0  ;;  %s6089_s20 = sld [smem:[#allocation8_spill]]  ;;  %vm91_vm0 = vcmask 261120  }
   0xb   :  { %v87_v0 = vld [vmem:[%s6089_s20] sm:$0xff]  ;;  %v88_v1 = vld [vmem:[%s6089_s20 + $0x8] sm:$0xff] }
   0xc   :  { %26 = vsyncpa [#allocation5], 0  ;;  %v92_v2 = vsel %vm91_vm0, %v87_v0, 0.0  ;;  %v95_v3 = vsel %vm91_vm0, %v88_v1, 0.0  ;;  %v135_v14 = vld [vmem:[%s6056_s4] sm:$0xff]  ;;  %v136_v15 = vld [vmem:[%s6056_s4 + $0x8] sm:$0xff]  ;;  %v76_v48 = vlaneseq }
   0xd   :  { %93 = vadd.xlane.f32.xlu0 %v92_v2  ;;  %v137_v16 = vld [vmem:[%s6056_s4 + $0x10] sm:$0xff]  ;;  %v4995_v17 = vpack.c.bf16 %v136_v15, %v135_v14  ;;  %v138_v18 = vld [vmem:[%s6056_s4 + $0x18] sm:$0xff]  ;;  %s6090_s0 = sld [smem:[#allocation10_spill]]  ;;  %s6091_s21 = sld [smem:[#allocation11_spill]]  ;;  %v5266_v36 = vmov 0.0   ;;  %vm5267_vm1 = vmmov 0  }
   0xe   :  { %v4999_v19 = vpack.c.bf16 %v138_v18, %v137_v16  ;;  %4701 = vmatprep.subr.mxu0 %v5266_v36  ;;  %4703 = vmatprep.mubr.msk.f32.mxu0 %vm5267_vm1, %v5266_v36  ;;  %v4391_v37 = vld [vmem:[%s6057_s5] ss:$0 sm:$0xff]  ;;  %s5268_s2 = smov 96   ;;  %vm246_vm2 = vcmask 64512   ;;  %v5269_v46 = vmov 1966171168  }
   0xf   :  { %4996 = vmatprep.subr.bf16.mxu1 %v4995_v17  ;;  %v74_v47 = vunpack.c.l.s4 %v5269_v46  ;;  %v77_v50 = vshrl.u32 %v76_v48, 7  ;;  %s6092_s25 = sld [smem:[#allocation9_spill]]  ;;  %s5270_s3 = smov 64   ;;  %vm4271_vm3 = vcmask 1041409   ;;  %vm4274_vm4 = vcmask 254976  }
  0x10   :  { %4998 = vmatpush3.bf16.msra.mxu1 %v4995_v17  ;;  %s5271_s26 = smov 88   ;;  %s5272_s27 = smov 120  }
  0x11   :  { %96 = vadd.xlane.f32.xlu0 %v95_v3  ;;  %5000 = vmatprep.subr.bf16.mxu1 %v4999_v19  ;;  %v75_v49 = vunpack.c.0.s8 %v74_v47  ;;  %v235_v54 = vsub.s32 0, %v77_v50  ;;  %s5273_s28 = smov 80   ;;  %s6083_s29 = smov 56  }
  0x12   :  { %s6079_s30 = smov 48   ;;  %s6077_s20 = smov 72  }
  0x13   :  { %v4389_v27 = vld [vmem:[%s6090_s0] ss:$0 sm:$0xff]  ;;  %v78_v51 = vsub.s32 %v75_v49, %v77_v50  ;;  %s6081_s0 = smov 112   ;;  %s6073_s22 = smov 40  }
  0x14   :  { %5002 = vmatpush3.bf16.msra.mxu1 %v4999_v19  ;;  %v4390_v29 = vld [vmem:[%s6091_s21] ss:$0 sm:$0xff]  ;;  %s6075_s21 = smov 104  }
  0x15   :  { %4681 = vmatprep.subr.mxu1 %v5266_v36  ;;  %v4388_v52 = vld.sshfl [vmem:[%s6092_s25] sm:$0x11 pattern:$0x75316420]  ;;  %s6098_s25 = smov 40  }
  0x16   :  { %v79_v53 = vrot.slane %v4388_v52, %v78_v51  ;;  %v72_v55 = vcombine.high %v4388_v52, %v4388_v52 }
  0x18   :  { %v5457_v56 = vrot.slane %v79_v53, %v235_v54  ;;  %v86_v57 = vrot.slane %v72_v55, %v78_v51 }
  0x1a   :  { %v5460_v61 = vrot.slane %v86_v57, %v235_v54 }
  0x9a   :  { %v94_v4 = vpop.xlane.xlu0 %93 }
  0x9b   :  { %v99_v5 = vmul.f32 0.03125, %v94_v4 }
  0x9d   :  { %v101_v6 = vsub.f32 %v87_v0, %v99_v5 }
  0x9e   :  { %v97_v7 = vpop.xlane.xlu0 %96 }
  0x9f   :  { %v100_v8 = vmul.f32 0.03125, %v97_v7  ;;  %v103_v9 = vmul.f32 %v101_v6, %v101_v6 }
  0xa1   :  { %v102_v10 = vsub.f32 %v88_v1, %v100_v8  ;;  %v105_v11 = vsel %vm91_vm0, %v103_v9, 0.0 }
  0xa2   :  { %106 = vadd.xlane.f32.xlu1 %v105_v11 }
  0xa3   :  { %v104_v12 = vmul.f32 %v102_v10, %v102_v10 }
  0xa5   :  { %v108_v13 = vsel %vm91_vm0, %v104_v12, 0.0 }
  0xa6   :  { %109 = vadd.xlane.f32.xlu1 %v108_v13 }
 0x12f   :  { %v107_v20 = vpop.xlane.xlu1 %106 }
 0x130   :  { %v111_v21 = vmul.f32 0.03125, %v107_v20 }
 0x132   :  { %v113_v22 = vadd.f32 1e-12, %v111_v21 }
 0x133   :  { %v110_v23 = vpop.xlane.xlu1 %109 }
 0x134   :  { %5126 = vrsqrt.f32 %v113_v22  ;;  %v112_v24 = vmul.f32 0.03125, %v110_v23 }
 0x136   :  { %v114_v25 = vadd.f32 1e-12, %v112_v24 }
 0x138   :  { %5128 = vrsqrt.f32 %v114_v25 }
 0x13e   :  { %v5127_v26 = vpop.eup %5126 }
 0x13f   :  { %v117_v28 = vmul.f32 %v5127_v26, %v101_v6 }
 0x141   :  { %v125_v30 = vmul.f32 %v4389_v27, %v117_v28 }
 0x142   :  { %v5129_v31 = vpop.eup %5128 }
 0x143   :  { %v118_v32 = vmul.f32 %v5129_v31, %v102_v10  ;;  %v5411_v33 = vadd.f32 %v4390_v29, %v125_v30 }
 0x145   :  { %v126_v34 = vmul.f32 %v4389_v27, %v118_v32  ;;  %4678 = vmatprep.mubr.msk.f32.mxu1 %vm91_vm0, %v5411_v33 }
 0x147   :  { %v5415_v35 = vadd.f32 %v4390_v29, %v126_v34 }
 0x149   :  { %4679 = vmatmul.mubr.msk.f32.vlgmr.msra.gmra.mrb[0].mxu1 %vm91_vm0, %v5415_v35 }
 0x14a   :  { %4683 = vmatprep.mubr.msk.f32.mxu1 %vm5267_vm1, %v5266_v36 }
 0x21c   :  { %v4680_v38 = vpop.f32.mrb[0].mxu1 }
 0x21d   :  { %v5428_v39 = vadd.f32 %v4680_v38, %v4391_v37  ;;  %v218_v40 = vpop.f32.mrb[1].mxu1 }
 0x21e   :  { %v5430_v41 = vadd.f32 %v4391_v37, %v218_v40 }
 0x21f   :  { %323 = vrot.lane.b32.xlu1 %v5428_v39, %s5268_s2  ;;  %v5447_v45 = vmul.f32 0.35355338, %v5428_v39 }
 0x220   :  { %244 = vrot.lane.b32.xlu0 %v5430_v41, %s5268_s2  ;;  %v5438_v43 = vmul.f32 0.35355338, %v5430_v41 }
 0x291   :  { %v324_v44 = vpop.permute.xlu1 %323 }
 0x292   :  { %v245_v42 = vpop.permute.xlu0 %244 }
 0x293   :  { %4682 = vmatpush3.xpose.msk.msra.mxu1 %vm246_vm2, %v245_v42 }
 0x294   :  { %4686 = vmatprep.subr.mxu1 %v5266_v36 }
 0x296   :  { %4684 = vmatmul.mubr.msk.f32.vlgmr.msra.gmra.mrb[2].mxu1 %vm246_vm2, %v5438_v43 }
 0x297   :  { %4687 = vmatpush3.xpose.msk.msra.mxu1 %vm246_vm2, %v324_v44  ;;  %4688 = vmatprep.mubr.msk.f32.mxu1 %vm5267_vm1, %v5266_v36 }
 0x298   :  { %4691 = vmatprep.subr.mxu1 %v5266_v36 }
 0x29a   :  { %4689 = vmatmul.mubr.msk.f32.vlgmr.msra.gmra.mrb[4].mxu1 %vm246_vm2, %v5447_v45 }
 0x29b   :  { %4693 = vmatprep.mubr.msk.f32.mxu1 %vm5267_vm1, %v5266_v36 }
 0x369   :  { %v318_v58 = vpop.f32.mrb[2].mxu1 }
 0x36a   :  { %v319_v59 = vadd.f32 %v318_v58, %v5457_v56  ;;  %v4685_v60 = vpop.f32.mrb[3].mxu1 }
 0x36c   :  { %v400_v62 = vsel %vm246_vm2, %v319_v59, -inf }
 0x36d   :  { %v396_v63 = vpop.f32.mrb[4].mxu1  ;;  %401 = vmax.xlane.f32.xlu1 %v400_v62 }
 0x36e   :  { %v397_v0 = vadd.f32 %v396_v63, %v5460_v61  ;;  %v4690_v1 = vpop.f32.mrb[5].mxu1 }
 0x370   :  { %v403_v2 = vsel %vm246_vm2, %v397_v0, -inf }
 0x371   :  { %404 = vmax.xlane.f32.xlu0 %v403_v2 }
 0x37e   :  { %498 = vrot.lane.b32.xlu1 %v5428_v39, %s5270_s3 }
 0x382   :  { %654 = vrot.lane.b32.xlu1 %v5428_v39, %s5271_s26 }
 0x3fa   :  { %v402_v3 = vpop.xlane.xlu1 %401 }
 0x3fb   :  { %v406_v4 = vsub.f32 %v319_v59, %v402_v3 }
 0x3fd   :  { %v408_v5 = vmul.f32 1.442695, %v406_v4 }
 0x3fe   :  { %v405_v6 = vpop.xlane.xlu0 %404  ;;  %v499_v13 = vpop.permute.xlu1 %498 }
 0x3ff   :  { %5130 = vpow2.f32 %v408_v5  ;;  %v407_v7 = vsub.f32 %v397_v0, %v405_v6 }
 0x401   :  { %v410_v8 = vmul.f32 1.442695, %v407_v7 }
 0x402   :  { %v655_v14 = vpop.permute.xlu1 %654 }
 0x403   :  { %5132 = vpow2.f32 %v410_v8 }
 0x409   :  { %v5131_v9 = vpop.eup %5130 }
 0x40a   :  { %v412_v10 = vsel %vm246_vm2, %v5131_v9, 0.0 }
 0x40b   :  { %413 = vadd.xlane.f32.xlu0 %v412_v10 }
 0x40d   :  { %v5133_v11 = vpop.eup %5132 }
 0x40e   :  { %v415_v12 = vsel %vm246_vm2, %v5133_v11, 0.0 }
 0x40f   :  { %416 = vadd.xlane.f32.xlu1 %v415_v12 }
 0x420   :  { %652 = vrot.lane.b32.xlu1 %v5447_v45, %s5272_s27 }
 0x421   :  { %422 = vrot.lane.b32.xlu0 %v5430_v41, %s5270_s3 }
 0x424   :  { %574 = vrot.lane.b32.xlu1 %v5438_v43, %s5272_s27 }
 0x425   :  { %576 = vrot.lane.b32.xlu0 %v5430_v41, %s5271_s26 }
 0x428   :  { %1068 = vrot.lane.b32.xlu1 %v5430_v41, %s5273_s28 }
 0x498   :  { %v414_v15 = vpop.xlane.xlu0 %413 }
 0x499   :  { %5134 = vrcp.f32 %v414_v15  ;;  %v229_v15 = vld [vmem:[%s6058_s6] sm:$0xff] }
 0x49c   :  { %v417_v16 = vpop.xlane.xlu1 %416  ;;  %v423_v17 = vpop.permute.xlu0 %422 }
 0x49d   :  { %5136 = vrcp.f32 %v417_v16  ;;  %4692 = vmatpush3.msra.mxu1 %v423_v17 }
 0x49e   :  { %4696 = vmatprep.subr.mxu1 %v5266_v36 }
 0x4a0   :  { %v653_v18 = vpop.permute.xlu1 %652  ;;  %v577_v19 = vpop.permute.xlu0 %576 }
 0x4a1   :  { %4702 = vmatpush3.xpose.msk.msra.mxu0 %vm246_vm2, %v577_v19 }
 0x4a2   :  { %4711 = vmatprep.subr.mxu0 %v5266_v36 }
 0x4a3   :  { %v5135_v20 = vpop.eup %5134 }
 0x4a4   :  { %v419_v21 = vmul.f32 %v5135_v20, %v5131_v9  ;;  %v575_v22 = vpop.permute.xlu1 %574 }
 0x4a5   :  { %4704 = vmatmul.mubr.msk.f32.vlgmr.msra.gmra.mrb[0].mxu0 %vm246_vm2, %v575_v22 }
 0x4a6   :  { %4694 = vmatmul.mubr.msk.f32.vlgmr.msra.gmra.mrb[6].mxu1 %vm246_vm2, %v419_v21  ;;  %4713 = vmatprep.mubr.msk.f32.mxu0 %vm5267_vm1, %v5266_v36 }
 0x4a7   :  { %v5137_v23 = vpop.eup %5136  ;;  %4697 = vmatpush3.msra.mxu1 %v499_v13  ;;  %4698 = vmatprep.mubr.msk.f32.mxu1 %vm5267_vm1, %v5266_v36 }
 0x4a8   :  { %v421_v24 = vmul.f32 %v5137_v23, %v5133_v11  ;;  %4706 = vmatprep.subr.mxu1 %v5266_v36  ;;  %v1069_v50 = vpop.permute.xlu1 %1068 }
 0x4aa   :  { %4699 = vmatmul.mubr.msk.f32.vlgmr.msra.gmra.mrb[8].mxu1 %vm246_vm2, %v421_v24 }
 0x4ab   :  { %4708 = vmatprep.mubr.msk.f32.mxu1 %vm5267_vm1, %v5266_v36 }
 0x4ae   :  { %4707 = vmatpush3.xpose.msk.msra.mxu1 %vm246_vm2, %v655_v14  ;;  %v230_v14 = vld [vmem:[%s6058_s6 + $0x8] sm:$0xff] }
 0x4af   :  { %4716 = vmatprep.subr.mxu1 %v5266_v36 }
 0x4b1   :  { %4709 = vmatmul.mubr.msk.f32.vlgmr.msra.gmra.mrb[10].mxu1 %vm246_vm2, %v653_v18 }
 0x4b2   :  { %4718 = vmatprep.mubr.msk.f32.mxu1 %vm5267_vm1, %v5266_v36 }
 0x578   :  { %v648_v25 = vpop.f32.mrb[0].mxu0 }
 0x579   :  { %v5499_v26 = vpop.f32.mrb[6].mxu1  ;;  %v4705_v27 = vpop.f32.mrb[1].mxu0  ;;  %v649_v48 = vadd.f32 %v648_v25, %v5457_v56 }
 0x57a   :  { %v4695_v28 = vpop.f32.mrb[7].mxu1 }
 0x57b   :  { %v730_v49 = vsel %vm246_vm2, %v649_v48, -inf }
 0x57d   :  { %v5501_v29 = vpop.f32.mrb[8].mxu1 }
 0x57e   :  { %v4700_v30 = vpop.f32.mrb[9].mxu1 }
 0x584   :  { %v726_v31 = vpop.f32.mrb[10].mxu1 }
 0x585   :  { %v727_v32 = vadd.f32 %v726_v31, %v5460_v61  ;;  %v4710_v34 = vpop.f32.mrb[11].mxu1  ;;  %v231_v31 = vld [vmem:[%s6058_s6 + $0x10] sm:$0xff] }
 0x587   :  { %v733_v37 = vsel %vm246_vm2, %v727_v32, -inf }
 0x588   :  { %734 = vmax.xlane.f32.xlu0 %v733_v37 }
 0x59e   :  { %828 = vrot.lane.b32.xlu0 %v5428_v39, %s6083_s29 }
 0x5a2   :  { %1066 = vrot.lane.b32.xlu0 %v5438_v43, %s6081_s0 }
 0x5a6   :  { %1144 = vrot.lane.b32.xlu0 %v5447_v45, %s6081_s0 }
 0x615   :  { %v735_v38 = vpop.xlane.xlu0 %734 }
 0x616   :  { %v737_v40 = vsub.f32 %v727_v32, %v735_v38 }
 0x618   :  { %v740_v42 = vmul.f32 1.442695, %v737_v40 }
 0x619   :  { %v829_v44 = vpop.permute.xlu0 %828 }
 0x61a   :  { %5138 = vpow2.f32 %v740_v42  ;;  %4717 = vmatpush3.msra.mxu1 %v829_v44 }
 0x61b   :  { %4731 = vmatprep.subr.mxu1 %v5266_v36 }
 0x61d   :  { %v1067_v54 = vpop.permute.xlu0 %1066 }
 0x621   :  { %v1145_v57 = vpop.permute.xlu0 %1144 }
 0x624   :  { %v5139_v46 = vpop.eup %5138 }
 0x625   :  { %v745_v47 = vsel %vm246_vm2, %v5139_v46, 0.0 }
 0x626   :  { %746 = vadd.xlane.f32.xlu1 %v745_v47 }
 0x637   :  { %1146 = vrot.lane.b32.xlu1 %v5428_v39, %s5273_s28 }
 0x65b   :  { %731 = vmax.xlane.f32.xlu1 %v730_v49 }
 0x6b3   :  { %v747_v51 = vpop.xlane.xlu1 %746 }
 0x6b4   :  { %5140 = vrcp.f32 %v747_v51 }
 0x6b7   :  { %v1147_v55 = vpop.permute.xlu1 %1146 }
 0x6be   :  { %v5141_v52 = vpop.eup %5140 }
 0x6bf   :  { %v751_v53 = vmul.f32 %v5141_v52, %v5139_v46 }
 0x6c1   :  { %4719 = vmatmul.mubr.msk.f32.vlgmr.msra.gmra.mrb[12].mxu1 %vm246_vm2, %v751_v53 }
 0x6c2   :  { %4732 = vmatpush3.xpose.msk.msra.mxu1 %vm246_vm2, %v1069_v50  ;;  %4733 = vmatprep.mubr.msk.f32.mxu1 %vm5267_vm1, %v5266_v36 }
 0x6c3   :  { %4736 = vmatprep.subr.mxu1 %v5266_v36 }
 0x6c5   :  { %4734 = vmatmul.mubr.msk.f32.vlgmr.msra.gmra.mrb[14].mxu1 %vm246_vm2, %v1067_v54 }
 0x6c6   :  { %4737 = vmatpush3.xpose.msk.msra.mxu1 %vm246_vm2, %v1147_v55  ;;  %4738 = vmatprep.mubr.msk.f32.mxu1 %vm5267_vm1, %v5266_v36 }
 0x6c7   :  { %4746 = vmatprep.subr.mxu1 %v5266_v36 }
 0x6c9   :  { %4739 = vmatmul.mubr.msk.f32.vlgmr.msra.gmra.mrb[16].mxu1 %vm246_vm2, %v1145_v57 }
 0x6ca   :  { %4748 = vmatprep.mubr.msk.f32.mxu1 %vm5267_vm1, %v5266_v36 }
 0x6e8   :  { %v732_v58 = vpop.xlane.xlu1 %731 }
 0x6e9   :  { %v736_v59 = vsub.f32 %v649_v48, %v732_v58 }
 0x6eb   :  { %v738_v60 = vmul.f32 1.442695, %v736_v59 }
 0x6ed   :  { %5142 = vpow2.f32 %v738_v60 }
 0x6f7   :  { %v5143_v62 = vpop.eup %5142 }
 0x6f8   :  { %v742_v63 = vsel %vm246_vm2, %v5143_v62, 0.0 }
 0x6f9   :  { %743 = vadd.xlane.f32.xlu0 %v742_v63 }
 0x70f   :  { %752 = vrot.lane.b32.xlu0 %v5430_v41, %s6083_s29 }
 0x713   :  { %1320 = vrot.lane.b32.xlu0 %v5428_v39, %s6079_s30 }
 0x717   :  { %1481 = vrot.lane.b32.xlu0 %v5430_v41, %s6077_s20 }
 0x71b   :  { %1559 = vrot.lane.b32.xlu0 %v5428_v39, %s6077_s20 }
 0x71f   :  { %1479 = vrot.lane.b32.xlu0 %v5438_v43, %s6075_s21 }
 0x786   :  { %v744_v0 = vpop.xlane.xlu0 %743 }
 0x787   :  { %5144 = vrcp.f32 %v744_v0 }
 0x78a   :  { %v753_v1 = vpop.permute.xlu0 %752 }
 0x78b   :  { %4712 = vmatpush3.msra.mxu0 %v753_v1 }
 0x78c   :  { %4721 = vmatprep.subr.mxu0 %v230_v14 }
 0x78e   :  { %v1321_v2 = vpop.permute.xlu0 %1320 }
 0x78f   :  { %4747 = vmatpush3.msra.mxu1 %v1321_v2 }
 0x790   :  { %4756 = vmatprep.subr.mxu1 %v5266_v36 }
 0x791   :  { %v5145_v3 = vpop.eup %5144 }
 0x792   :  { %v749_v4 = vmul.f32 %v5145_v3, %v5143_v62  ;;  %v1482_v34 = vpop.permute.xlu0 %1481 }
 0x794   :  { %4714 = vmatmul.mubr.msk.f32.vlgmr.msra.gmra.mrb[2].mxu0 %vm246_vm2, %v749_v4  ;;  %v900_v5 = vpop.f32.mrb[12].mxu1 }
 0x795   :  { %v4720_v6 = vpop.f32.mrb[13].mxu1  ;;  %4722 = vmatpush3.msra.mxu0 %v230_v14 }
 0x796   :  { %4726 = vmatprep.subr.mxu0 %v229_v15  ;;  %v1560_v38 = vpop.permute.xlu0 %1559 }
 0x798   :  { %v1140_v7 = vpop.f32.mrb[14].mxu1 }
 0x799   :  { %v1141_v8 = vadd.f32 %v1140_v7, %v5457_v56  ;;  %v4735_v9 = vpop.f32.mrb[15].mxu1 }
 0x79a   :  { %v1480_v42 = vpop.permute.xlu0 %1479 }
 0x79b   :  { %v1222_v43 = vsel %vm246_vm2, %v1141_v8, -inf }
 0x79c   :  { %1223 = vmax.xlane.f32.xlu1 %v1222_v43  ;;  %v1218_v10 = vpop.f32.mrb[16].mxu1 }
 0x79d   :  { %v1219_v11 = vadd.f32 %v1218_v10, %v5460_v61  ;;  %v4740_v12 = vpop.f32.mrb[17].mxu1 }
 0x79e   :  { %v232_v12 = vld [vmem:[%s6058_s6 + $0x18] sm:$0xff] }
 0x79f   :  { %v1225_v13 = vsel %vm246_vm2, %v1219_v11, -inf }
 0x7a0   :  { %1226 = vmax.xlane.f32.xlu1 %v1225_v13 }
 0x829   :  { %v1224_v16 = vpop.xlane.xlu1 %1223 }
 0x82a   :  { %v1228_v17 = vsub.f32 %v1141_v8, %v1224_v16  ;;  %v4426_v16 = vld [vmem:[%s6059_s7] ss:$0 sm:$0xff] }
 0x82c   :  { %v1230_v18 = vmul.f32 1.442695, %v1228_v17 }
 0x82d   :  { %v1227_v19 = vpop.xlane.xlu1 %1226 }
 0x82e   :  { %5146 = vpow2.f32 %v1230_v18  ;;  %v1229_v20 = vsub.f32 %v1219_v11, %v1227_v19 }
 0x830   :  { %v1232_v21 = vmul.f32 1.442695, %v1229_v20 }
 0x832   :  { %5148 = vpow2.f32 %v1232_v21 }
 0x838   :  { %v5147_v22 = vpop.eup %5146 }
 0x839   :  { %v1234_v23 = vsel %vm246_vm2, %v5147_v22, 0.0 }
 0x83a   :  { %1235 = vadd.xlane.f32.xlu1 %v1234_v23 }
 0x83c   :  { %v5149_v24 = vpop.eup %5148 }
 0x83d   :  { %v1237_v25 = vsel %vm246_vm2, %v5149_v24, 0.0 }
 0x83e   :  { %1238 = vadd.xlane.f32.xlu1 %v1237_v25 }
 0x84f   :  { %1244 = vrot.lane.b32.xlu1 %v5430_v41, %s6079_s30 }
 0x853   :  { %1557 = vrot.lane.b32.xlu1 %v5447_v45, %s6075_s21 }
 0x867   :  { %v824_v27 = vpop.f32.mrb[2].mxu0 }
 0x868   :  { %v4715_v28 = vpop.f32.mrb[3].mxu0  ;;  %4723 = vmatprep.mubr.msk.f32.mxu0 %vm246_vm2, %v824_v27 }
 0x869   :  { %4724 = vmatmul.mubr.msk.f32.vlgmr.msra.gmra.mrb[4].mxu0 %vm246_vm2, %v900_v5 }
 0x86a   :  { %4728 = vmatprep.mubr.msk.f32.mxu0 %vm246_vm2, %v5499_v26  ;;  %4727 = vmatpush3.msra.mxu0 %v229_v15 }
 0x86b   :  { %4741 = vmatprep.subr.mxu0 %v5266_v36 }
 0x871   :  { %4729 = vmatmul.mubr.msk.f32.vlgmr.msra.gmra.mrb[4].mxu0 %vm246_vm2, %v5501_v29 }
 0x872   :  { %4743 = vmatprep.mubr.msk.f32.mxu0 %vm5267_vm1, %v5266_v36 }
 0x8c7   :  { %v1236_v30 = vpop.xlane.xlu1 %1235 }
 0x8c8   :  { %5150 = vrcp.f32 %v1236_v30 }
 0x8cb   :  { %v1239_v45 = vpop.xlane.xlu1 %1238 }
 0x8cc   :  { %5152 = vrcp.f32 %v1239_v45 }
 0x8cf   :  { %v1245_v32 = vpop.permute.xlu1 %1244 }
 0x8d0   :  { %4742 = vmatpush3.msra.mxu0 %v1245_v32 }
 0x8d1   :  { %4751 = vmatprep.subr.mxu0 %v231_v31 }
 0x8d2   :  { %v5151_v26 = vpop.eup %5150 }
 0x8d3   :  { %v1241_v37 = vmul.f32 %v5151_v26, %v5147_v22  ;;  %v1558_v49 = vpop.permute.xlu1 %1557 }
 0x8d5   :  { %4744 = vmatmul.mubr.msk.f32.vlgmr.msra.gmra.mrb[6].mxu0 %vm246_vm2, %v1241_v37  ;;  %v1948_v37 = vld [vmem:[%s6062_s10 + $0x8] sm:$0xff] }
 0x8d6   :  { %v5153_v29 = vpop.eup %5152  ;;  %4752 = vmatpush3.msra.mxu0 %v231_v31 }
 0x8d7   :  { %v1243_v40 = vmul.f32 %v5153_v29, %v5149_v24  ;;  %4761 = vmatprep.subr.mxu0 %v5266_v36 }
 0x8d9   :  { %4749 = vmatmul.mubr.msk.f32.vlgmr.msra.gmra.mrb[18].mxu1 %vm246_vm2, %v1243_v40  ;;  %v1950_v40 = vld [vmem:[%s6062_s10 + $0x18] sm:$0xff] }
 0x8da   :  { %4757 = vmatpush3.xpose.msk.msra.mxu1 %vm246_vm2, %v1482_v34  ;;  %4758 = vmatprep.mubr.msk.f32.mxu1 %vm5267_vm1, %v5266_v36 }
 0x8db   :  { %4766 = vmatprep.subr.mxu1 %v5266_v36 }
 0x8dd   :  { %4759 = vmatmul.mubr.msk.f32.vlgmr.msra.gmra.mrb[20].mxu1 %vm246_vm2, %v1480_v42 }
 0x8de   :  { %4768 = vmatprep.mubr.msk.f32.mxu1 %vm5267_vm1, %v5266_v36 }
 0x9a8   :  { %v1316_v44 = vpop.f32.mrb[6].mxu0 }
 0x9a9   :  { %v4745_v46 = vpop.f32.mrb[7].mxu0  ;;  %4753 = vmatprep.mubr.msk.f32.mxu0 %vm246_vm2, %v1316_v44  ;;  %v2057_v44 = vld [vmem:[%s6064_s12] sm:$0xff] }
 0x9aa   :  { %v2058_v46 = vld [vmem:[%s6064_s12 + $0x8] sm:$0xff] }
 0x9ac   :  { %v1392_v47 = vpop.f32.mrb[18].mxu1 }
 0x9ad   :  { %v4750_v48 = vpop.f32.mrb[19].mxu1  ;;  %4754 = vmatmul.mubr.msk.f32.vlgmr.msra.gmra.mrb[4].mxu0 %vm246_vm2, %v1392_v47  ;;  %v5011_v47 = vpack.c.bf16 %v2058_v46, %v2057_v44 }
 0x9ae   :  { %4762 = vmatpush3.xpose.msk.msra.mxu0 %vm246_vm2, %v1560_v38  ;;  %4763 = vmatprep.mubr.msk.f32.mxu0 %vm5267_vm1, %v5266_v36  ;;  %v1949_v38 = vld [vmem:[%s6062_s10 + $0x10] sm:$0xff] }
 0x9af   :  { %4771 = vmatprep.subr.mxu0 %v5266_v36  ;;  %v5007_v42 = vpack.c.bf16 %v1950_v40, %v1949_v38 }
 0x9b0   :  { %v1553_v50 = vpop.f32.mrb[20].mxu1 }
 0x9b1   :  { %v1554_v51 = vadd.f32 %v1553_v50, %v5457_v56  ;;  %v4760_v52 = vpop.f32.mrb[21].mxu1  ;;  %4764 = vmatmul.mubr.msk.f32.vlgmr.msra.gmra.mrb[8].mxu0 %vm246_vm2, %v1558_v49 }
 0x9b2   :  { %4773 = vmatprep.mubr.msk.f32.mxu0 %vm5267_vm1, %v5266_v36 }
 0x9b3   :  { %v1635_v53 = vsel %vm246_vm2, %v1554_v51, -inf }
 0x9b4   :  { %1636 = vmax.xlane.f32.xlu0 %v1635_v53 }
 0xa41   :  { %v1637_v54 = vpop.xlane.xlu0 %1636 }
 0xa42   :  { %v1641_v55 = vsub.f32 %v1554_v51, %v1637_v54 }
 0xa44   :  { %v1643_v57 = vmul.f32 1.442695, %v1641_v55  ;;  %v4427_v55 = vld [vmem:[%s6060_s8] ss:$0 sm:$0xff] }
 0xa46   :  { %5154 = vpow2.f32 %v1643_v57 }
 0xa50   :  { %v5155_v58 = vpop.eup %5154 }
 0xa51   :  { %v1647_v59 = vsel %vm246_vm2, %v5155_v58, 0.0 }
 0xa52   :  { %1648 = vadd.xlane.f32.xlu0 %v1647_v59 }
 0xa84   :  { %v1631_v60 = vpop.f32.mrb[8].mxu0 }
 0xa85   :  { %v1632_v62 = vadd.f32 %v1631_v60, %v5460_v61  ;;  %v4765_v63 = vpop.f32.mrb[9].mxu0  ;;  %v4428_v60 = vld [vmem:[%s6061_s9] ss:$0 sm:$0xff] }
 0xa87   :  { %v1638_v0 = vsel %vm246_vm2, %v1632_v62, -inf }
 0xa88   :  { %1639 = vmax.xlane.f32.xlu1 %v1638_v0 }
 0xa99   :  { %1733 = vrot.lane.b32.xlu1 %v5428_v39, %s6073_s22 }
 0xadf   :  { %v1649_v7 = vpop.xlane.xlu0 %1648 }
 0xb15   :  { %v1640_v1 = vpop.xlane.xlu1 %1639 }
 0xb16   :  { %v1642_v2 = vsub.f32 %v1632_v62, %v1640_v1 }
 0xb18   :  { %v1645_v3 = vmul.f32 1.442695, %v1642_v2  ;;  %v2059_v2 = vld [vmem:[%s6064_s12 + $0x10] sm:$0xff] }
 0xb19   :  { %v1734_v4 = vpop.permute.xlu1 %1733 }
 0xb1a   :  { %5156 = vpow2.f32 %v1645_v3  ;;  %4772 = vmatpush3.msra.mxu0 %v1734_v4  ;;  %v2060_v3 = vld [vmem:[%s6064_s12 + $0x18] sm:$0xff] }
 0xb1b   :  { %5158 = vrcp.f32 %v1649_v7  ;;  %4776 = vmatprep.subr.mxu0 %v232_v12  ;;  %v5015_v4 = vpack.c.bf16 %v2060_v3, %v2059_v2 }
 0xb24   :  { %v5157_v5 = vpop.eup %5156 }
 0xb25   :  { %v1650_v6 = vsel %vm246_vm2, %v5157_v5, 0.0  ;;  %v5159_v9 = vpop.eup %5158 }
 0xb26   :  { %1651 = vadd.xlane.f32.xlu0 %v1650_v6  ;;  %v1654_v43 = vmul.f32 %v5159_v9, %v5155_v58  ;;  %v2062_v6 = vld [vmem:[%s6064_s12 + $0x28] sm:$0xff]  ;;  %v2064_v9 = vld [vmem:[%s6064_s12 + $0x38] sm:$0xff] }
 0xb3c   :  { %1657 = vrot.lane.b32.xlu0 %v5430_v41, %s6073_s22 }
 0xbb3   :  { %v1652_v8 = vpop.xlane.xlu0 %1651 }
 0xbb4   :  { %5160 = vrcp.f32 %v1652_v8  ;;  %v2063_v8 = vld [vmem:[%s6064_s12 + $0x30] sm:$0xff] }
 0xbb7   :  { %v1658_v39 = vpop.permute.xlu0 %1657 }
 0xbb8   :  { %4767 = vmatpush3.msra.mxu1 %v1658_v39  ;;  %v2065_v39 = vld [vmem:[%s6064_s12 + $0x40] sm:$0xff] }
 0xbb9   :  { %4769 = vmatmul.mubr.msk.f32.vlgmr.msra.gmra.mrb[22].mxu1 %vm246_vm2, %v1654_v43  ;;  %v5023_v43 = vpack.c.bf16 %v2064_v9, %v2063_v8  ;;  %v4438_v8 = vld [vmem:[%s6056_s4 + $0x38] sm:$0xff] }
 0xbbe   :  { %v5161_v10 = vpop.eup %5160 }
 0xbbf   :  { %v1656_v11 = vmul.f32 %v5161_v10, %v5157_v5  ;;  %v2061_v5 = vld [vmem:[%s6064_s12 + $0x20] sm:$0xff]  ;;  %v2066_v10 = vld [vmem:[%s6064_s12 + $0x48] sm:$0xff] }
 0xbc0   :  { %v5019_v7 = vpack.c.bf16 %v2062_v6, %v2061_v5  ;;  %v4436_v5 = vld [vmem:[%s6056_s4 + $0x28] sm:$0xff] }
 0xbc1   :  { %4774 = vmatmul.mubr.msk.f32.vlgmr.msra.gmra.mrb[10].mxu0 %vm246_vm2, %v1656_v11  ;;  %v5027_v11 = vpack.c.bf16 %v2066_v10, %v2065_v39 }
 0xbc2   :  { %4777 = vmatpush3.msra.mxu0 %v232_v12  ;;  %v2067_v12 = vld [vmem:[%s6064_s12 + $0x50] sm:$0xff] }
 0xbc3   :  { %5012 = vmatprep.subr.bf16.mxu0 %v5011_v47 }
 0xc8c   :  { %v1729_v41 = vpop.f32.mrb[22].mxu1 }
 0xc8d   :  { %v4770_v13 = vpop.f32.mrb[23].mxu1  ;;  %4778 = vmatprep.mubr.msk.f32.mxu0 %vm246_vm2, %v1729_v41  ;;  %v2068_v41 = vld [vmem:[%s6064_s12 + $0x58] sm:$0xff] }
 0xc8e   :  { %v5031_v13 = vpack.c.bf16 %v2068_v41, %v2067_v12 }
 0xc94   :  { %v1805_v14 = vpop.f32.mrb[10].mxu0 }
 0xc95   :  { %v4775_v15 = vpop.f32.mrb[11].mxu0  ;;  %4779 = vmatmul.mubr.msk.f32.vlgmr.msra.gmra.mrb[4].mxu0 %vm246_vm2, %v1805_v14  ;;  %v2069_v14 = vld [vmem:[%s6064_s12 + $0x60] sm:$0xff] }
 0xc96   :  { %5014 = vmatpush3.bf16.msra.mxu0 %v5011_v47  ;;  %v2070_v15 = vld [vmem:[%s6064_s12 + $0x68] sm:$0xff]  ;;  %v4432_v47 = vld [vmem:[%s6065_s13] ss:$0 sm:$0xff] }
 0xc97   :  { %5016 = vmatprep.subr.bf16.mxu0 %v5015_v4 }
 0xc9a   :  { %5018 = vmatpush3.bf16.msra.mxu0 %v5015_v4 }
 0xc9b   :  { %5020 = vmatprep.subr.bf16.mxu0 %v5019_v7 }
 0xc9e   :  { %5022 = vmatpush3.bf16.msra.mxu0 %v5019_v7  ;;  %v4437_v7 = vld [vmem:[%s6056_s4 + $0x30] sm:$0xff] }
 0xc9f   :  { %5024 = vmatprep.subr.bf16.mxu0 %v5023_v43  ;;  %v5047_v9 = vpack.c.bf16 %v4438_v8, %v4437_v7 }
 0xca2   :  { %5026 = vmatpush3.bf16.msra.mxu0 %v5023_v43 }
 0xca3   :  { %5028 = vmatprep.subr.bf16.mxu0 %v5027_v11 }
 0xca6   :  { %5030 = vmatpush3.bf16.msra.mxu0 %v5027_v11 }
 0xca7   :  { %5032 = vmatprep.subr.bf16.mxu0 %v5031_v13 }
 0xcaa   :  { %5034 = vmatpush3.bf16.msra.mxu0 %v5031_v13 }
 0xd68   :  { %v4780_v17 = vpop.f32.mrb[4].mxu0 }
 0xd69   :  { %v1900_v18 = vadd.f32 %v4780_v17, %v4426_v16  ;;  %v1881_v19 = vpop.f32.mrb[5].mxu0  ;;  %v2071_v17 = vld [vmem:[%s6064_s12 + $0x70] sm:$0xff] }
 0xd6a   :  { %v1899_v20 = vadd.f32 %v4426_v16, %v1881_v19  ;;  %v5035_v16 = vpack.c.bf16 %v2070_v15, %v2069_v14  ;;  %v4433_v14 = vld [vmem:[%s6066_s14] ss:$0 sm:$0xff] }
 0xd6b   :  { %v1902_v21 = vadd.f32 %v1900_v18, %v5415_v35  ;;  %v2072_v18 = vld [vmem:[%s6064_s12 + $0x78] sm:$0xff] }
 0xd6c   :  { %v1901_v22 = vadd.f32 %v1899_v20, %v5411_v33  ;;  %v1947_v33 = vld [vmem:[%s6062_s10] sm:$0xff]  ;;  %5036 = vmatprep.subr.bf16.mxu0 %v5035_v16  ;;  %v5039_v19 = vpack.c.bf16 %v2072_v18, %v2071_v17 }
 0xd6d   :  { %v1908_v23 = vsel %vm91_vm0, %v1902_v21, 0.0  ;;  %v5003_v29 = vpack.c.bf16 %v1948_v37, %v1947_v33  ;;  %5038 = vmatpush3.bf16.msra.mxu0 %v5035_v16  ;;  %v4429_v20 = vld [vmem:[%s6063_s11] ss:$0 sm:$0xff] }
 0xd6e   :  { %1909 = vadd.xlane.f32.xlu0 %v1908_v23  ;;  %v1905_v24 = vsel %vm91_vm0, %v1901_v22, 0.0  ;;  %5040 = vmatprep.subr.bf16.mxu0 %v5039_v19  ;;  %v4434_v18 = vld [vmem:[%s6067_s15] ss:$0 sm:$0xff] }
 0xd6f   :  { %1906 = vadd.xlane.f32.xlu1 %v1905_v24  ;;  %5004 = vmatprep.subr.bf16.mxu1 %v5003_v29 }
 0xd70   :  { %5006 = vmatpush3.bf16.msra.mxu1 %v5003_v29 }
 0xd71   :  { %5008 = vmatprep.subr.bf16.mxu1 %v5007_v42  ;;  %5042 = vmatpush3.bf16.msra.mxu0 %v5039_v19 }
 0xd72   :  { %4868 = vmatprep.subr.mxu0 %v5266_v36 }
 0xd74   :  { %5010 = vmatpush3.bf16.msra.mxu1 %v5007_v42 }
 0xdfb   :  { %v1910_v25 = vpop.xlane.xlu0 %1909 }
 0xdfc   :  { %v1912_v27 = vmul.f32 0.03125, %v1910_v25  ;;  %v1907_v28 = vpop.xlane.xlu1 %1906 }
 0xdfd   :  { %v1911_v30 = vmul.f32 0.03125, %v1907_v28 }
 0xdfe   :  { %v1914_v45 = vsub.f32 %v1902_v21, %v1912_v27 }
 0xdff   :  { %v1913_v31 = vsub.f32 %v1901_v22, %v1911_v30 }
 0xe00   :  { %v1916_v32 = vmul.f32 %v1914_v45, %v1914_v45 }
 0xe01   :  { %v1915_v34 = vmul.f32 %v1913_v31, %v1913_v31 }
 0xe02   :  { %v1920_v26 = vsel %vm91_vm0, %v1916_v32, 0.0 }
 0xe03   :  { %1921 = vadd.xlane.f32.xlu1 %v1920_v26  ;;  %v1917_v35 = vsel %vm91_vm0, %v1915_v34, 0.0 }
 0xe04   :  { %1918 = vadd.xlane.f32.xlu0 %v1917_v35 }
 0xe90   :  { %v1922_v48 = vpop.xlane.xlu1 %1921 }
 0xe91   :  { %v1924_v49 = vmul.f32 0.03125, %v1922_v48  ;;  %v1919_v50 = vpop.xlane.xlu0 %1918 }
 0xe92   :  { %v1923_v51 = vmul.f32 0.03125, %v1919_v50 }
 0xe93   :  { %v1926_v52 = vadd.f32 1e-12, %v1924_v49 }
 0xe94   :  { %v1925_v53 = vadd.f32 1e-12, %v1923_v51 }
 0xe95   :  { %5162 = vrsqrt.f32 %v1926_v52 }
 0xe96   :  { %5164 = vrsqrt.f32 %v1925_v53 }
 0xe9f   :  { %v5163_v54 = vpop.eup %5162 }
 0xea0   :  { %v5165_v57 = vpop.eup %5164  ;;  %v1930_v58 = vmul.f32 %v5163_v54, %v1914_v45 }
 0xea1   :  { %v1929_v59 = vmul.f32 %v5165_v57, %v1913_v31 }
 0xea2   :  { %v1938_v62 = vmul.f32 %v4427_v55, %v1930_v58 }
 0xea3   :  { %v1937_v63 = vmul.f32 %v4427_v55, %v1929_v59 }
 0xea4   :  { %v5642_v1 = vadd.f32 %v4428_v60, %v1938_v62 }
 0xea5   :  { %v5640_v0 = vadd.f32 %v4428_v60, %v1937_v63 }
 0xea7   :  { %4789 = vmatprep.mubr.msk.f32.mxu1 %vm91_vm0, %v5640_v0 }
 0xea8   :  { %4790 = vmatmul.mubr.msk.f32.vlgmr.msra.gmra.mrb[24].mxu1 %vm91_vm0, %v5642_v1 }
 0xf7b   :  { %v4791_v21 = vpop.f32.mrb[24].mxu1 }
 0xf7c   :  { %v2036_v22 = vadd.f32 %v4791_v21, %v4429_v20  ;;  %v2030_v23 = vpop.f32.mrb[25].mxu1 }
 0xf7d   :  { %v2031_v24 = vadd.f32 %v4429_v20, %v2030_v23  ;;  %v4440_v23 = vld [vmem:[%s6057_s5 + $0x1] ss:$0 sm:$0xff]  ;;  %s6093_s5 = smov 56  }
 0xf7e   :  { %v2042_v25 = vmul.f32 0.044715, %v2036_v22  ;;  %v2040_v42 = vmul.f32 0.5, %v2036_v22 }
 0xf7f   :  { %v2041_v27 = vmul.f32 0.044715, %v2031_v24  ;;  %v2039_v38 = vmul.f32 0.5, %v2031_v24 }
 0xf80   :  { %v2044_v28 = vmul.f32 %v2042_v25, %v2036_v22 }
 0xf81   :  { %v2043_v30 = vmul.f32 %v2041_v27, %v2031_v24 }
 0xf82   :  { %v2046_v45 = vmul.f32 %v2044_v28, %v2036_v22 }
 0xf83   :  { %v2045_v31 = vmul.f32 %v2043_v30, %v2031_v24 }
 0xf84   :  { %v2048_v32 = vadd.f32 %v2046_v45, %v2036_v22 }
 0xf85   :  { %v2047_v34 = vadd.f32 %v2045_v31, %v2031_v24 }
 0xf86   :  { %v2050_v26 = vmul.f32 0.7978846, %v2048_v32 }
 0xf87   :  { %v2049_v35 = vmul.f32 0.7978846, %v2047_v34 }
 0xf88   :  { %5166 = vtanh.f32 %v2050_v26 }
 0xf89   :  { %5168 = vtanh.f32 %v2049_v35 }
 0xf92   :  { %v5167_v33 = vpop.eup %5166 }
 0xf93   :  { %v5169_v37 = vpop.eup %5168  ;;  %v2054_v29 = vadd.f32 1.0, %v5167_v33 }
 0xf94   :  { %v2053_v40 = vadd.f32 1.0, %v5169_v37 }
 0xf95   :  { %v2056_v46 = vmul.f32 %v2054_v29, %v2040_v42 }
 0xf96   :  { %v2055_v44 = vmul.f32 %v2053_v40, %v2039_v38 }
 0xf98   :  { %4824 = vmatprep.mubr.f32.mxu0 %v2055_v44 }
 0xf99   :  { %4825 = vmatmul.mubr.f32.vlgmr.msra.gmra.mrb[12].mxu0 %v2056_v46 }
 0xf9a   :  { %4870 = vmatprep.mubr.msk.f32.mxu0 %vm5267_vm1, %v5266_v36 }
0x106c   :  { %v4826_v48 = vpop.f32.mrb[12].mxu0 }
0x106d   :  { %v2152_v49 = vadd.f32 %v4826_v48, %v4432_v47  ;;  %v2146_v50 = vpop.f32.mrb[13].mxu0 }
0x106e   :  { %v2147_v51 = vadd.f32 %v4432_v47, %v2146_v50 }
0x106f   :  { %v2156_v52 = vadd.f32 %v2152_v49, %v5642_v1 }
0x1070   :  { %v2155_v53 = vadd.f32 %v2147_v51, %v5640_v0  ;;  %v4435_v0 = vld [vmem:[%s6056_s4 + $0x20] sm:$0xff] }
0x1071   :  { %v2162_v54 = vsel %vm91_vm0, %v2156_v52, 0.0  ;;  %v5043_v6 = vpack.c.bf16 %v4436_v5, %v4435_v0 }
0x1072   :  { %2163 = vadd.xlane.f32.xlu1 %v2162_v54  ;;  %v2159_v55 = vsel %vm91_vm0, %v2155_v53, 0.0 }
0x1073   :  { %2160 = vadd.xlane.f32.xlu0 %v2159_v55  ;;  %5044 = vmatprep.subr.bf16.mxu1 %v5043_v6 }
0x1074   :  { %5046 = vmatpush3.bf16.msra.mxu1 %v5043_v6 }
0x1075   :  { %5048 = vmatprep.subr.bf16.mxu1 %v5047_v9 }
0x1078   :  { %5050 = vmatpush3.bf16.msra.mxu1 %v5047_v9 }
0x1079   :  { %4838 = vmatprep.subr.mxu1 %v5266_v36 }
0x10ff   :  { %v2164_v57 = vpop.xlane.xlu1 %2163 }
0x1100   :  { %v2166_v58 = vmul.f32 0.03125, %v2164_v57  ;;  %v2161_v59 = vpop.xlane.xlu0 %2160 }
0x1101   :  { %v2165_v60 = vmul.f32 0.03125, %v2161_v59 }
0x1102   :  { %v2168_v62 = vsub.f32 %v2156_v52, %v2166_v58 }
0x1103   :  { %v2167_v63 = vsub.f32 %v2155_v53, %v2165_v60 }
0x1104   :  { %v2170_v2 = vmul.f32 %v2168_v62, %v2168_v62 }
0x1105   :  { %v2169_v3 = vmul.f32 %v2167_v63, %v2167_v63 }
0x1106   :  { %v2174_v4 = vsel %vm91_vm0, %v2170_v2, 0.0 }
0x1107   :  { %2175 = vadd.xlane.f32.xlu1 %v2174_v4  ;;  %v2171_v1 = vsel %vm91_vm0, %v2169_v3, 0.0 }
0x1108   :  { %2172 = vadd.xlane.f32.xlu0 %v2171_v1 }
0x1194   :  { %v2176_v43 = vpop.xlane.xlu1 %2175 }
0x1195   :  { %v2178_v39 = vmul.f32 0.03125, %v2176_v43  ;;  %v2173_v10 = vpop.xlane.xlu0 %2172 }
0x1196   :  { %v2177_v11 = vmul.f32 0.03125, %v2173_v10 }
0x1197   :  { %v2180_v12 = vadd.f32 1e-12, %v2178_v39 }
0x1198   :  { %v2179_v41 = vadd.f32 1e-12, %v2177_v11 }
0x1199   :  { %5170 = vrsqrt.f32 %v2180_v12 }
0x119a   :  { %5172 = vrsqrt.f32 %v2179_v41 }
0x11a3   :  { %v5171_v13 = vpop.eup %5170 }
0x11a4   :  { %v5173_v15 = vpop.eup %5172  ;;  %v2184_v16 = vmul.f32 %v5171_v13, %v2168_v62 }
0x11a5   :  { %v2183_v17 = vmul.f32 %v5173_v15, %v2167_v63 }
0x11a6   :  { %v2192_v19 = vmul.f32 %v4433_v14, %v2184_v16 }
0x11a7   :  { %v2191_v20 = vmul.f32 %v4433_v14, %v2183_v17 }
0x11a8   :  { %v5726_v22 = vadd.f32 %v4434_v18, %v2192_v19 }
0x11a9   :  { %v5724_v21 = vadd.f32 %v4434_v18, %v2191_v20 }
0x11ab   :  { %4835 = vmatprep.mubr.msk.f32.mxu1 %vm91_vm0, %v5724_v21 }
0x11ac   :  { %4836 = vmatmul.mubr.msk.f32.vlgmr.msra.gmra.mrb[26].mxu1 %vm91_vm0, %v5726_v22 }
0x11ad   :  { %4840 = vmatprep.mubr.msk.f32.mxu1 %vm5267_vm1, %v5266_v36 }
0x127f   :  { %v4837_v24 = vpop.f32.mrb[26].mxu1 }
0x1280   :  { %v5737_v25 = vadd.f32 %v4837_v24, %v4440_v23  ;;  %v2286_v27 = vpop.f32.mrb[27].mxu1 }
0x1281   :  { %v5739_v28 = vadd.f32 %v4440_v23, %v2286_v27 }
0x1282   :  { %2381 = vrot.lane.b32.xlu1 %v5737_v25, %s5268_s2  ;;  %v5756_v32 = vmul.f32 0.35355338, %v5737_v25 }
0x1283   :  { %2303 = vrot.lane.b32.xlu0 %v5739_v28, %s5268_s2  ;;  %v5747_v45 = vmul.f32 0.35355338, %v5739_v28  ;;  %s6094_s2 = smov 112  }
0x12f4   :  { %v2382_v31 = vpop.permute.xlu1 %2381 }
0x12f5   :  { %v2304_v30 = vpop.permute.xlu0 %2303 }
0x12f6   :  { %4839 = vmatpush3.xpose.msk.msra.mxu1 %vm246_vm2, %v2304_v30 }
0x12f7   :  { %4843 = vmatprep.subr.mxu1 %v5266_v36 }
0x12f9   :  { %4841 = vmatmul.mubr.msk.f32.vlgmr.msra.gmra.mrb[28].mxu1 %vm246_vm2, %v5747_v45 }
0x12fa   :  { %4844 = vmatpush3.xpose.msk.msra.mxu1 %vm246_vm2, %v2382_v31  ;;  %4845 = vmatprep.mubr.msk.f32.mxu1 %vm5267_vm1, %v5266_v36 }
0x12fb   :  { %4848 = vmatprep.subr.mxu1 %v5266_v36 }
0x12fd   :  { %4846 = vmatmul.mubr.msk.f32.vlgmr.msra.gmra.mrb[30].mxu1 %vm246_vm2, %v5756_v32 }
0x12fe   :  { %4850 = vmatprep.mubr.msk.f32.mxu1 %vm5267_vm1, %v5266_v36 }
0x13cc   :  { %v2376_v34 = vpop.f32.mrb[28].mxu1 }
0x13cd   :  { %v2377_v26 = vadd.f32 %v2376_v34, %v5457_v56  ;;  %v4842_v35 = vpop.f32.mrb[29].mxu1 }
0x13cf   :  { %v2458_v33 = vsel %vm246_vm2, %v2377_v26, -inf }
0x13d0   :  { %2459 = vmax.xlane.f32.xlu1 %v2458_v33  ;;  %v2454_v37 = vpop.f32.mrb[30].mxu1 }
0x13d1   :  { %v2455_v29 = vadd.f32 %v2454_v37, %v5460_v61  ;;  %v4847_v38 = vpop.f32.mrb[31].mxu1 }
0x13d3   :  { %v2461_v40 = vsel %vm246_vm2, %v2455_v29, -inf }
0x13d4   :  { %2462 = vmax.xlane.f32.xlu0 %v2461_v40 }
0x13e1   :  { %2556 = vrot.lane.b32.xlu1 %v5737_v25, %s5270_s3 }
0x13e5   :  { %2634 = vrot.lane.b32.xlu1 %v5739_v28, %s5271_s26 }
0x13e9   :  { %2632 = vrot.lane.b32.xlu1 %v5747_v45, %s5272_s27 }
0x145d   :  { %v2460_v42 = vpop.xlane.xlu1 %2459 }
0x145e   :  { %v2464_v44 = vsub.f32 %v2377_v26, %v2460_v42 }
0x1460   :  { %v2466_v46 = vmul.f32 1.442695, %v2464_v44 }
0x1461   :  { %v2463_v47 = vpop.xlane.xlu0 %2462  ;;  %v2557_v54 = vpop.permute.xlu1 %2556 }
0x1462   :  { %5174 = vpow2.f32 %v2466_v46  ;;  %v2465_v48 = vsub.f32 %v2455_v29, %v2463_v47 }
0x1464   :  { %v2468_v49 = vmul.f32 1.442695, %v2465_v48 }
0x1465   :  { %v2635_v55 = vpop.permute.xlu1 %2634 }
0x1466   :  { %5176 = vpow2.f32 %v2468_v49 }
0x1469   :  { %v2633_v57 = vpop.permute.xlu1 %2632 }
0x146c   :  { %v5175_v50 = vpop.eup %5174 }
0x146d   :  { %v2470_v51 = vsel %vm246_vm2, %v5175_v50, 0.0 }
0x146e   :  { %2471 = vadd.xlane.f32.xlu0 %v2470_v51 }
0x1470   :  { %v5177_v52 = vpop.eup %5176 }
0x1471   :  { %v2473_v53 = vsel %vm246_vm2, %v5177_v52, 0.0 }
0x1472   :  { %2474 = vadd.xlane.f32.xlu1 %v2473_v53 }
0x1483   :  { %2710 = vrot.lane.b32.xlu1 %v5756_v32, %s5272_s27  ;;  %s6097_s27 = smov 104  }
0x1484   :  { %2480 = vrot.lane.b32.xlu0 %v5739_v28, %s5270_s3  ;;  %s6095_s3 = smov 48  }
0x1487   :  { %3126 = vrot.lane.b32.xlu1 %v5739_v28, %s5273_s28 }
0x1488   :  { %2712 = vrot.lane.b32.xlu0 %v5737_v25, %s5271_s26  ;;  %s6096_s26 = smov 72  }
0x14fb   :  { %v2472_v58 = vpop.xlane.xlu0 %2471 }
0x14fc   :  { %5178 = vrcp.f32 %v2472_v58 }
0x14ff   :  { %v2475_v59 = vpop.xlane.xlu1 %2474  ;;  %v2481_v60 = vpop.permute.xlu0 %2480 }
0x1500   :  { %5180 = vrcp.f32 %v2475_v59  ;;  %4849 = vmatpush3.msra.mxu1 %v2481_v60 }
0x1501   :  { %4853 = vmatprep.subr.mxu1 %v5266_v36 }
0x1503   :  { %v2713_v4 = vpop.permute.xlu0 %2712  ;;  %v2711_v1 = vpop.permute.xlu1 %2710 }
0x1506   :  { %v5179_v62 = vpop.eup %5178 }
0x1507   :  { %v2477_v63 = vmul.f32 %v5179_v62, %v5175_v50  ;;  %v3127_v19 = vpop.permute.xlu1 %3126 }
0x1509   :  { %4851 = vmatmul.mubr.msk.f32.vlgmr.msra.gmra.mrb[32].mxu1 %vm246_vm2, %v2477_v63 }
0x150a   :  { %v5181_v2 = vpop.eup %5180  ;;  %4854 = vmatpush3.msra.mxu1 %v2557_v54  ;;  %4855 = vmatprep.mubr.msk.f32.mxu1 %vm5267_vm1, %v5266_v36 }
0x150b   :  { %v2479_v3 = vmul.f32 %v5181_v2, %v5177_v52  ;;  %4858 = vmatprep.subr.mxu1 %v5266_v36 }
0x150d   :  { %4856 = vmatmul.mubr.msk.f32.vlgmr.msra.gmra.mrb[34].mxu1 %vm246_vm2, %v2479_v3 }
0x150e   :  { %4860 = vmatprep.mubr.msk.f32.mxu1 %vm5267_vm1, %v5266_v36 }
0x1511   :  { %4859 = vmatpush3.xpose.msk.msra.mxu1 %vm246_vm2, %v2635_v55  ;;  %v4444_v55 = vld [vmem:[%s6058_s6 + $0x28] sm:$0xff] }
0x1512   :  { %4863 = vmatprep.subr.mxu1 %v5266_v36 }
0x1514   :  { %4861 = vmatmul.mubr.msk.f32.vlgmr.msra.gmra.mrb[36].mxu1 %vm246_vm2, %v2633_v57  ;;  %v4443_v57 = vld [vmem:[%s6058_s6 + $0x20] sm:$0xff] }
0x1515   :  { %4864 = vmatpush3.xpose.msk.msra.mxu1 %vm246_vm2, %v2713_v4  ;;  %4865 = vmatprep.mubr.msk.f32.mxu1 %vm5267_vm1, %v5266_v36 }
0x1516   :  { %4873 = vmatprep.subr.mxu1 %v5266_v36 }
0x1518   :  { %4866 = vmatmul.mubr.msk.f32.vlgmr.msra.gmra.mrb[38].mxu1 %vm246_vm2, %v2711_v1 }
0x1519   :  { %4875 = vmatprep.mubr.msk.f32.mxu1 %vm5267_vm1, %v5266_v36 }
0x15dc   :  { %v5801_v0 = vpop.f32.mrb[32].mxu1 }
0x15dd   :  { %v4852_v5 = vpop.f32.mrb[33].mxu1 }
0x15e0   :  { %v5803_v6 = vpop.f32.mrb[34].mxu1 }
0x15e1   :  { %v4857_v7 = vpop.f32.mrb[35].mxu1 }
0x15e7   :  { %v2706_v8 = vpop.f32.mrb[36].mxu1 }
0x15e8   :  { %v4862_v9 = vpop.f32.mrb[37].mxu1  ;;  %v2707_v17 = vadd.f32 %v2706_v8, %v5457_v56 }
0x15ea   :  { %v2788_v18 = vsel %vm246_vm2, %v2707_v17, -inf }
0x15eb   :  { %v2784_v43 = vpop.f32.mrb[38].mxu1 }
0x15ec   :  { %v2785_v39 = vadd.f32 %v2784_v43, %v5460_v61  ;;  %v4867_v10 = vpop.f32.mrb[39].mxu1  ;;  %v4445_v43 = vld [vmem:[%s6058_s6 + $0x30] sm:$0xff] }
0x15ee   :  { %v2791_v11 = vsel %vm246_vm2, %v2785_v39, -inf }
0x15ef   :  { %2792 = vmax.xlane.f32.xlu0 %v2791_v11 }
0x1605   :  { %2886 = vrot.lane.b32.xlu0 %v5737_v25, %s6093_s5 }
0x1609   :  { %3124 = vrot.lane.b32.xlu0 %v5747_v45, %s6094_s2 }
0x160d   :  { %3202 = vrot.lane.b32.xlu0 %v5756_v32, %s6094_s2 }
0x167c   :  { %v2793_v12 = vpop.xlane.xlu0 %2792 }
0x167d   :  { %v2795_v41 = vsub.f32 %v2785_v39, %v2793_v12 }
0x167f   :  { %v2798_v13 = vmul.f32 1.442695, %v2795_v41 }
0x1680   :  { %v2887_v14 = vpop.permute.xlu0 %2886 }
0x1681   :  { %5182 = vpow2.f32 %v2798_v13  ;;  %4874 = vmatpush3.msra.mxu1 %v2887_v14 }
0x1682   :  { %4888 = vmatprep.subr.mxu1 %v5266_v36 }
0x1684   :  { %v3125_v27 = vpop.permute.xlu0 %3124 }
0x1688   :  { %v3203_v31 = vpop.permute.xlu0 %3202 }
0x168b   :  { %v5183_v15 = vpop.eup %5182 }
0x168c   :  { %v2803_v16 = vsel %vm246_vm2, %v5183_v15, 0.0 }
0x168d   :  { %2804 = vadd.xlane.f32.xlu1 %v2803_v16 }
0x169e   :  { %3204 = vrot.lane.b32.xlu1 %v5737_v25, %s5273_s28 }
0x16c2   :  { %2789 = vmax.xlane.f32.xlu1 %v2788_v18 }
0x171a   :  { %v2805_v20 = vpop.xlane.xlu1 %2804 }
0x171b   :  { %5184 = vrcp.f32 %v2805_v20 }
0x171e   :  { %v3205_v30 = vpop.permute.xlu1 %3204 }
0x1725   :  { %v5185_v23 = vpop.eup %5184 }
0x1726   :  { %v2809_v24 = vmul.f32 %v5185_v23, %v5183_v15 }
0x1728   :  { %4876 = vmatmul.mubr.msk.f32.vlgmr.msra.gmra.mrb[40].mxu1 %vm246_vm2, %v2809_v24 }
0x1729   :  { %4889 = vmatpush3.xpose.msk.msra.mxu1 %vm246_vm2, %v3127_v19  ;;  %4890 = vmatprep.mubr.msk.f32.mxu1 %vm5267_vm1, %v5266_v36 }
0x172a   :  { %4893 = vmatprep.subr.mxu1 %v5266_v36 }
0x172c   :  { %4891 = vmatmul.mubr.msk.f32.vlgmr.msra.gmra.mrb[42].mxu1 %vm246_vm2, %v3125_v27 }
0x172d   :  { %4894 = vmatpush3.xpose.msk.msra.mxu1 %vm246_vm2, %v3205_v30  ;;  %4895 = vmatprep.mubr.msk.f32.mxu1 %vm5267_vm1, %v5266_v36 }
0x172e   :  { %4903 = vmatprep.subr.mxu1 %v5266_v36 }
0x1730   :  { %4896 = vmatmul.mubr.msk.f32.vlgmr.msra.gmra.mrb[44].mxu1 %vm246_vm2, %v3203_v31 }
0x1731   :  { %4905 = vmatprep.mubr.msk.f32.mxu1 %vm5267_vm1, %v5266_v36 }
0x174f   :  { %v2790_v34 = vpop.xlane.xlu1 %2789 }
0x1750   :  { %v2794_v26 = vsub.f32 %v2707_v17, %v2790_v34 }
0x1752   :  { %v2796_v35 = vmul.f32 1.442695, %v2794_v26 }
0x1754   :  { %5186 = vpow2.f32 %v2796_v35 }
0x175e   :  { %v5187_v33 = vpop.eup %5186 }
0x175f   :  { %v2800_v37 = vsel %vm246_vm2, %v5187_v33, 0.0 }
0x1760   :  { %2801 = vadd.xlane.f32.xlu0 %v2800_v37 }
0x1776   :  { %2810 = vrot.lane.b32.xlu0 %v5739_v28, %s6093_s5 }
0x177a   :  { %3378 = vrot.lane.b32.xlu0 %v5737_v25, %s6095_s3 }
0x177e   :  { %3539 = vrot.lane.b32.xlu0 %v5739_v28, %s6096_s26 }
0x1782   :  { %3617 = vrot.lane.b32.xlu0 %v5737_v25, %s6096_s26 }
0x1786   :  { %3537 = vrot.lane.b32.xlu0 %v5747_v45, %s6097_s27 }
0x17ed   :  { %v2802_v29 = vpop.xlane.xlu0 %2801 }
0x17ee   :  { %5188 = vrcp.f32 %v2802_v29 }
0x17f1   :  { %v2811_v38 = vpop.permute.xlu0 %2810 }
0x17f2   :  { %4869 = vmatpush3.msra.mxu0 %v2811_v38 }
0x17f3   :  { %4878 = vmatprep.subr.mxu0 %v4444_v55 }
0x17f5   :  { %v3379_v40 = vpop.permute.xlu0 %3378 }
0x17f6   :  { %4904 = vmatpush3.msra.mxu1 %v3379_v40 }
0x17f7   :  { %4913 = vmatprep.subr.mxu1 %v5266_v36 }
0x17f8   :  { %v5189_v42 = vpop.eup %5188 }
0x17f9   :  { %v2807_v44 = vmul.f32 %v5189_v42, %v5187_v33  ;;  %v3540_v10 = vpop.permute.xlu0 %3539 }
0x17fb   :  { %4871 = vmatmul.mubr.msk.f32.vlgmr.msra.gmra.mrb[14].mxu0 %vm246_vm2, %v2807_v44  ;;  %v2958_v46 = vpop.f32.mrb[40].mxu1 }
0x17fc   :  { %v4877_v47 = vpop.f32.mrb[41].mxu1  ;;  %4879 = vmatpush3.msra.mxu0 %v4444_v55  ;;  %v4480_v55 = vld [vmem:[%s6059_s7 + $0x1] ss:$0 sm:$0xff] }
0x17fd   :  { %4883 = vmatprep.subr.mxu0 %v4443_v57  ;;  %v3618_v12 = vpop.permute.xlu0 %3617 }
0x17ff   :  { %v3198_v48 = vpop.f32.mrb[42].mxu1 }
0x1800   :  { %v3199_v49 = vadd.f32 %v3198_v48, %v5457_v56  ;;  %v4892_v50 = vpop.f32.mrb[43].mxu1 }
0x1801   :  { %v3538_v13 = vpop.permute.xlu0 %3537 }
0x1802   :  { %v3280_v45 = vsel %vm246_vm2, %v3199_v49, -inf }
0x1803   :  { %3281 = vmax.xlane.f32.xlu1 %v3280_v45  ;;  %v3276_v51 = vpop.f32.mrb[44].mxu1 }
0x1804   :  { %v3277_v52 = vadd.f32 %v3276_v51, %v5460_v61  ;;  %v4897_v53 = vpop.f32.mrb[45].mxu1  ;;  %v4446_v51 = vld [vmem:[%s6058_s6 + $0x38] sm:$0xff] }
0x1806   :  { %v3283_v54 = vsel %vm246_vm2, %v3277_v52, -inf }
0x1807   :  { %3284 = vmax.xlane.f32.xlu1 %v3283_v54 }
0x1890   :  { %v3282_v58 = vpop.xlane.xlu1 %3281 }
0x1891   :  { %v3286_v59 = vsub.f32 %v3199_v49, %v3282_v58 }
0x1893   :  { %v3288_v60 = vmul.f32 1.442695, %v3286_v59 }
0x1894   :  { %v3285_v62 = vpop.xlane.xlu1 %3284 }
0x1895   :  { %5190 = vpow2.f32 %v3288_v60  ;;  %v3287_v63 = vsub.f32 %v3277_v52, %v3285_v62 }
0x1897   :  { %v3290_v2 = vmul.f32 1.442695, %v3287_v63 }
0x1899   :  { %5192 = vpow2.f32 %v3290_v2 }
0x189f   :  { %v5191_v3 = vpop.eup %5190 }
0x18a0   :  { %v3292_v4 = vsel %vm246_vm2, %v5191_v3, 0.0 }
0x18a1   :  { %3293 = vadd.xlane.f32.xlu1 %v3292_v4 }
0x18a3   :  { %v5193_v1 = vpop.eup %5192 }
0x18a4   :  { %v3295_v5 = vsel %vm246_vm2, %v5193_v1, 0.0 }
0x18a5   :  { %3296 = vadd.xlane.f32.xlu1 %v3295_v5 }
0x18b6   :  { %3302 = vrot.lane.b32.xlu1 %v5739_v28, %s6095_s3 }
0x18ba   :  { %3615 = vrot.lane.b32.xlu1 %v5756_v32, %s6097_s27 }
0x18ce   :  { %v2882_v7 = vpop.f32.mrb[14].mxu0 }
0x18cf   :  { %v4872_v8 = vpop.f32.mrb[15].mxu0  ;;  %4880 = vmatprep.mubr.msk.f32.mxu0 %vm246_vm2, %v2882_v7 }
0x18d0   :  { %4881 = vmatmul.mubr.msk.f32.vlgmr.msra.gmra.mrb[16].mxu0 %vm246_vm2, %v2958_v46 }
0x18d1   :  { %4885 = vmatprep.mubr.msk.f32.mxu0 %vm246_vm2, %v5801_v0  ;;  %4884 = vmatpush3.msra.mxu0 %v4443_v57 }
0x18d2   :  { %4898 = vmatprep.subr.mxu0 %v5266_v36 }
0x18d8   :  { %4886 = vmatmul.mubr.msk.f32.vlgmr.msra.gmra.mrb[16].mxu0 %vm246_vm2, %v5803_v6 }
0x18d9   :  { %4900 = vmatprep.mubr.msk.f32.mxu0 %vm5267_vm1, %v5266_v36 }
0x192e   :  { %v3294_v9 = vpop.xlane.xlu1 %3293 }
0x192f   :  { %5194 = vrcp.f32 %v3294_v9 }
0x1932   :  { %v3297_v32 = vpop.xlane.xlu1 %3296 }
0x1933   :  { %5196 = vrcp.f32 %v3297_v32 }
0x1936   :  { %v3303_v39 = vpop.permute.xlu1 %3302 }
0x1937   :  { %4899 = vmatpush3.msra.mxu0 %v3303_v39 }
0x1938   :  { %4908 = vmatprep.subr.mxu0 %v4445_v43 }
0x1939   :  { %v5195_v0 = vpop.eup %5194 }
0x193a   :  { %v3299_v11 = vmul.f32 %v5195_v0, %v5191_v3  ;;  %v3616_v18 = vpop.permute.xlu1 %3615 }
0x193c   :  { %4901 = vmatmul.mubr.msk.f32.vlgmr.msra.gmra.mrb[18].mxu0 %vm246_vm2, %v3299_v11  ;;  %v4487_v11 = vld [vmem:[%s6062_s10 + $0x30] sm:$0xff] }
0x193d   :  { %v5197_v6 = vpop.eup %5196  ;;  %4909 = vmatpush3.msra.mxu0 %v4445_v43 }
0x193e   :  { %v3301_v41 = vmul.f32 %v5197_v6, %v5193_v1  ;;  %4918 = vmatprep.subr.mxu0 %v5266_v36  ;;  %v4488_v6 = vld [vmem:[%s6062_s10 + $0x38] sm:$0xff] }
0x1940   :  { %4906 = vmatmul.mubr.msk.f32.vlgmr.msra.gmra.mrb[46].mxu1 %vm246_vm2, %v3301_v41  ;;  %v4493_v41 = vld [vmem:[%s6064_s12 + $0x80] sm:$0xff] }
0x1941   :  { %4914 = vmatpush3.xpose.msk.msra.mxu1 %vm246_vm2, %v3540_v10  ;;  %4915 = vmatprep.mubr.msk.f32.mxu1 %vm5267_vm1, %v5266_v36  ;;  %v4486_v10 = vld [vmem:[%s6062_s10 + $0x28] sm:$0xff] }
0x1942   :  { %4923 = vmatprep.subr.mxu1 %v5266_v36 }
0x1944   :  { %4916 = vmatmul.mubr.msk.f32.vlgmr.msra.gmra.mrb[48].mxu1 %vm246_vm2, %v3538_v13  ;;  %v4494_v13 = vld [vmem:[%s6064_s12 + $0x88] sm:$0xff] }
0x1945   :  { %4925 = vmatprep.mubr.msk.f32.mxu1 %vm5267_vm1, %v5266_v36 }
0x1a0f   :  { %v3374_v14 = vpop.f32.mrb[18].mxu0 }
0x1a10   :  { %v4902_v15 = vpop.f32.mrb[19].mxu0  ;;  %4910 = vmatprep.mubr.msk.f32.mxu0 %vm246_vm2, %v3374_v14  ;;  %v5059_v14 = vpack.c.bf16 %v4494_v13, %v4493_v41 }
0x1a13   :  { %v3450_v16 = vpop.f32.mrb[46].mxu1 }
0x1a14   :  { %v4907_v17 = vpop.f32.mrb[47].mxu1  ;;  %4911 = vmatmul.mubr.msk.f32.vlgmr.msra.gmra.mrb[16].mxu0 %vm246_vm2, %v3450_v16 }
0x1a15   :  { %4919 = vmatpush3.xpose.msk.msra.mxu0 %vm246_vm2, %v3618_v12  ;;  %4920 = vmatprep.mubr.msk.f32.mxu0 %vm5267_vm1, %v5266_v36  ;;  %v5055_v12 = vpack.c.bf16 %v4488_v6, %v4487_v11 }
0x1a16   :  { %4928 = vmatprep.subr.mxu0 %v5266_v36 }
0x1a17   :  { %v3611_v19 = vpop.f32.mrb[48].mxu1 }
0x1a18   :  { %v3612_v20 = vadd.f32 %v3611_v19, %v5457_v56  ;;  %v4917_v23 = vpop.f32.mrb[49].mxu1  ;;  %4921 = vmatmul.mubr.msk.f32.vlgmr.msra.gmra.mrb[20].mxu0 %vm246_vm2, %v3616_v18 }
0x1a19   :  { %4930 = vmatprep.mubr.msk.f32.mxu0 %vm5267_vm1, %v5266_v36 }
0x1a1a   :  { %v3693_v24 = vsel %vm246_vm2, %v3612_v20, -inf }
0x1a1b   :  { %3694 = vmax.xlane.f32.xlu0 %v3693_v24  ;;  %v4483_v24 = vld [vmem:[%s6060_s8 + $0x1] ss:$0 sm:$0xff] }
0x1aa8   :  { %v3695_v27 = vpop.xlane.xlu0 %3694 }
0x1aa9   :  { %v3699_v30 = vsub.f32 %v3612_v20, %v3695_v27 }
0x1aab   :  { %v3701_v31 = vmul.f32 1.442695, %v3699_v30 }
0x1aad   :  { %5198 = vpow2.f32 %v3701_v31 }
0x1ab7   :  { %v5199_v34 = vpop.eup %5198 }
0x1ab8   :  { %v3705_v26 = vsel %vm246_vm2, %v5199_v34, 0.0 }
0x1ab9   :  { %3706 = vadd.xlane.f32.xlu0 %v3705_v26 }
0x1aeb   :  { %v3689_v35 = vpop.f32.mrb[20].mxu0 }
0x1aec   :  { %v3690_v56 = vadd.f32 %v3689_v35, %v5460_v61  ;;  %v4922_v33 = vpop.f32.mrb[21].mxu0 }
0x1aee   :  { %v3696_v37 = vsel %vm246_vm2, %v3690_v56, -inf }
0x1aef   :  { %3697 = vmax.xlane.f32.xlu1 %v3696_v37  ;;  %v4495_v37 = vld [vmem:[%s6064_s12 + $0x90] sm:$0xff] }
0x1b00   :  { %3791 = vrot.lane.b32.xlu1 %v5737_v25, %s6098_s25 }
0x1b46   :  { %v3707_v61 = vpop.xlane.xlu0 %3706 }
0x1b7c   :  { %v3698_v29 = vpop.xlane.xlu1 %3697 }
0x1b7d   :  { %v3700_v38 = vsub.f32 %v3690_v56, %v3698_v29  ;;  %v4496_v29 = vld [vmem:[%s6064_s12 + $0x98] sm:$0xff] }
0x1b7f   :  { %v3703_v40 = vmul.f32 1.442695, %v3700_v38  ;;  %v5063_v38 = vpack.c.bf16 %v4496_v29, %v4495_v37  ;;  %v4277_v37 = vld [vmem:[%s6068_s16 + $0x8] sm:$0xff] }
0x1b80   :  { %v3792_v42 = vpop.permute.xlu1 %3791 }
0x1b81   :  { %5200 = vpow2.f32 %v3703_v40  ;;  %4929 = vmatpush3.msra.mxu0 %v3792_v42  ;;  %v4497_v40 = vld [vmem:[%s6064_s12 + $0xa0] sm:$0xff]  ;;  %v4498_v42 = vld [vmem:[%s6064_s12 + $0xa8] sm:$0xff] }
0x1b82   :  { %5202 = vrcp.f32 %v3707_v61  ;;  %4933 = vmatprep.subr.mxu0 %v4446_v51 }
0x1b8b   :  { %v5201_v44 = vpop.eup %5200 }
0x1b8c   :  { %v3708_v46 = vsel %vm246_vm2, %v5201_v44, 0.0  ;;  %v5203_v48 = vpop.eup %5202 }
0x1b8d   :  { %3709 = vadd.xlane.f32.xlu0 %v3708_v46  ;;  %v3712_v49 = vmul.f32 %v5203_v48, %v5199_v34  ;;  %v4484_v34 = vld [vmem:[%s6061_s9 + $0x1] ss:$0 sm:$0xff]  ;;  %v4500_v46 = vld [vmem:[%s6064_s12 + $0xb8] sm:$0xff]  ;;  %v4502_v48 = vld [vmem:[%s6064_s12 + $0xc8] sm:$0xff] }
0x1ba3   :  { %3715 = vrot.lane.b32.xlu0 %v5739_v28, %s6098_s25 }
0x1c1a   :  { %v3710_v47 = vpop.xlane.xlu0 %3709 }
0x1c1b   :  { %5204 = vrcp.f32 %v3710_v47  ;;  %v4501_v47 = vld [vmem:[%s6064_s12 + $0xc0] sm:$0xff] }
0x1c1e   :  { %v3716_v25 = vpop.permute.xlu0 %3715 }
0x1c1f   :  { %4924 = vmatpush3.msra.mxu1 %v3716_v25  ;;  %v4503_v25 = vld [vmem:[%s6064_s12 + $0xd0] sm:$0xff] }
0x1c20   :  { %4926 = vmatmul.mubr.msk.f32.vlgmr.msra.gmra.mrb[50].mxu1 %vm246_vm2, %v3712_v49  ;;  %v5075_v49 = vpack.c.bf16 %v4502_v48, %v4501_v47 }
0x1c25   :  { %v5205_v50 = vpop.eup %5204 }
0x1c26   :  { %v3714_v45 = vmul.f32 %v5205_v50, %v5201_v44  ;;  %v4499_v44 = vld [vmem:[%s6064_s12 + $0xb0] sm:$0xff]  ;;  %v4504_v50 = vld [vmem:[%s6064_s12 + $0xd8] sm:$0xff] }
0x1c27   :  { %v5071_v61 = vpack.c.bf16 %v4500_v46, %v4499_v44 }
0x1c28   :  { %4931 = vmatmul.mubr.msk.f32.vlgmr.msra.gmra.mrb[22].mxu0 %vm246_vm2, %v3714_v45  ;;  %v5079_v45 = vpack.c.bf16 %v4504_v50, %v4503_v25  ;;  %v4513_v50 = vld [vmem:[%s6066_s14 + $0x1] ss:$0 sm:$0xff] }
0x1c29   :  { %4934 = vmatpush3.msra.mxu0 %v4446_v51  ;;  %v4505_v51 = vld [vmem:[%s6064_s12 + $0xe0] sm:$0xff] }
0x1c2a   :  { %5060 = vmatprep.subr.bf16.mxu0 %v5059_v14 }
0x1cf3   :  { %v3787_v28 = vpop.f32.mrb[50].mxu1 }
0x1cf4   :  { %v4927_v52 = vpop.f32.mrb[51].mxu1  ;;  %4935 = vmatprep.mubr.msk.f32.mxu0 %vm246_vm2, %v3787_v28  ;;  %v4506_v28 = vld [vmem:[%s6064_s12 + $0xe8] sm:$0xff] }
0x1cf5   :  { %v5083_v52 = vpack.c.bf16 %v4506_v28, %v4505_v51 }
0x1cfb   :  { %v3863_v53 = vpop.f32.mrb[22].mxu0 }
0x1cfc   :  { %v4932_v54 = vpop.f32.mrb[23].mxu0  ;;  %4936 = vmatmul.mubr.msk.f32.vlgmr.msra.gmra.mrb[16].mxu0 %vm246_vm2, %v3863_v53  ;;  %v4507_v53 = vld [vmem:[%s6064_s12 + $0xf0] sm:$0xff] }
0x1cfd   :  { %5062 = vmatpush3.bf16.msra.mxu0 %v5059_v14  ;;  %v4508_v54 = vld [vmem:[%s6064_s12 + $0xf8] sm:$0xff] }
0x1cfe   :  { %5064 = vmatprep.subr.bf16.mxu0 %v5063_v38 }
0x1d01   :  { %5066 = vmatpush3.bf16.msra.mxu0 %v5063_v38  ;;  %v4278_v38 = vld [vmem:[%s6068_s16 + $0x10] sm:$0xff] }
0x1dcf   :  { %v4937_v57 = vpop.f32.mrb[16].mxu0 }
0x1dd0   :  { %v3959_v58 = vadd.f32 %v4937_v57, %v4480_v55  ;;  %v3939_v59 = vpop.f32.mrb[17].mxu0  ;;  %v4490_v57 = vld [vmem:[%s6063_s11 + $0x1] ss:$0 sm:$0xff] }
0x1dd1   :  { %v3958_v60 = vadd.f32 %v4480_v55, %v3939_v59  ;;  %v5087_v55 = vpack.c.bf16 %v4508_v54, %v4507_v53 }
0x1dd2   :  { %v3961_v62 = vadd.f32 %v3959_v58, %v5726_v22 }
0x1dd3   :  { %v3960_v63 = vadd.f32 %v3958_v60, %v5724_v21  ;;  %v4485_v21 = vld [vmem:[%s6062_s10 + $0x20] sm:$0xff]  ;;  %s5281_s10 = smov [#allocation4]  }
0x1dd4   :  { %v3969_v2 = vsel %vm91_vm0, %v3961_v62, 0.0  ;;  %v5051_v0 = vpack.c.bf16 %v4486_v10, %v4485_v21  ;;  %s4376_s14 = sshll.u32 %s5281_s10, 4  ;;  %s4377_s14 = int_to_ptr.vmem [resolvable:$true] %s4376_s14 }
0x1dd5   :  { %3970 = vadd.xlane.f32.xlu0 %v3969_v2  ;;  %v3966_v3 = vsel %vm91_vm0, %v3960_v63, 0.0  ;;  %s5218_s23 = scalar_lea.vmem %s4377_s14, 32  ;;  %p5223_p1 = scmp.lt.s32.totalorder %s4377_s14, %s4377_s14 }
0x1dd6   :  { %3967 = vadd.xlane.f32.xlu1 %v3966_v3  ;;  %5052 = vmatprep.subr.bf16.mxu1 %v5051_v0  ;;  %p5219_p0 = scmp.ne.s32.totalorder %s4377_s14, %s5218_s23  ;;  %p5224_p2 = scmp.lt.s32.totalorder %s5218_s23, %s5218_s23 }
0x1dd7   :  { %5054 = vmatpush3.bf16.msra.mxu1 %v5051_v0 }
0x1dd8   :  { %5056 = vmatprep.subr.bf16.mxu1 %v5055_v12  ;;  %p5225_p3 = por %p5224_p2, %p5223_p1 }
0x1dda   :  { %p5226_p4 = pnand %p5225_p3, %p5219_p0 }
0x1ddb   :  { %5058 = vmatpush3.bf16.msra.mxu1 %v5055_v12  ;;  %v4510_v12 = vld [vmem:[%s6065_s13 + $0x1] ss:$0 sm:$0xff] }
0x1e62   :  { %v3971_v4 = vpop.xlane.xlu0 %3970 }
0x1e63   :  { %v3973_v1 = vmul.f32 0.03125, %v3971_v4  ;;  %v3968_v5 = vpop.xlane.xlu1 %3967 }
0x1e64   :  { %v3972_v7 = vmul.f32 0.03125, %v3968_v5 }
0x1e65   :  { %v3975_v8 = vsub.f32 %v3961_v62, %v3973_v1 }
0x1e66   :  { %v3974_v9 = vsub.f32 %v3960_v63, %v3972_v7 }
0x1e67   :  { %v3977_v32 = vmul.f32 %v3975_v8, %v3975_v8 }
0x1e68   :  { %v3976_v43 = vmul.f32 %v3974_v9, %v3974_v9 }
0x1e69   :  { %v3981_v39 = vsel %vm91_vm0, %v3977_v32, 0.0 }
0x1e6a   :  { %3982 = vadd.xlane.f32.xlu1 %v3981_v39  ;;  %v3978_v22 = vsel %vm91_vm0, %v3976_v43, 0.0 }
0x1e6b   :  { %3979 = vadd.xlane.f32.xlu0 %v3978_v22 }
0x1ef7   :  { %v3983_v15 = vpop.xlane.xlu1 %3982 }
0x1ef8   :  { %v3985_v16 = vmul.f32 0.03125, %v3983_v15  ;;  %v3980_v17 = vpop.xlane.xlu0 %3979 }
0x1ef9   :  { %v3984_v18 = vmul.f32 0.03125, %v3980_v17 }
0x1efa   :  { %v3987_v19 = vadd.f32 1e-12, %v3985_v16 }
0x1efb   :  { %v3986_v20 = vadd.f32 1e-12, %v3984_v18 }
0x1efc   :  { %5206 = vrsqrt.f32 %v3987_v19 }
0x1efd   :  { %5208 = vrsqrt.f32 %v3986_v20 }
0x1f06   :  { %v5207_v23 = vpop.eup %5206 }
0x1f07   :  { %v5209_v27 = vpop.eup %5208  ;;  %v3991_v30 = vmul.f32 %v5207_v23, %v3975_v8 }
0x1f08   :  { %v3990_v31 = vmul.f32 %v5209_v27, %v3974_v9 }
0x1f09   :  { %v3999_v26 = vmul.f32 %v4483_v24, %v3991_v30 }
0x1f0a   :  { %v3998_v35 = vmul.f32 %v4483_v24, %v3990_v31 }
0x1f0b   :  { %v5944_v33 = vadd.f32 %v4484_v34, %v3999_v26 }
0x1f0c   :  { %v5942_v56 = vadd.f32 %v4484_v34, %v3998_v35 }
0x1f0e   :  { %4946 = vmatprep.mubr.msk.f32.mxu1 %vm91_vm0, %v5942_v56 }
0x1f0f   :  { %4947 = vmatmul.mubr.msk.f32.vlgmr.msra.gmra.mrb[52].mxu1 %vm91_vm0, %v5944_v33 }
0x1f10   :  { %4992 = vmatprep.mubr.msk.f32.mxu1 %vm5267_vm1, %v5266_v36  ;;  %v5067_v36 = vpack.c.bf16 %v4498_v42, %v4497_v40  ;;  %v4279_v40 = vld [vmem:[%s6068_s16 + $0x18] sm:$0xff]  ;;  %v5280_v42 = vmov 0.0|0.0  }
0x1f11   :  { %5091 = vmatprep.subr.bf16.mxu1 %v5280_v42 }
0x1f12   :  { %5068 = vmatprep.subr.bf16.mxu0 %v5067_v36 }
0x1f13   :  { %5070 = vmatpush3.bf16.msra.mxu0 %v5067_v36  ;;  %v5095_v36 = vpack.c.bf16 %v4279_v40, %v4278_v38 }
0x1f14   :  { %5072 = vmatprep.subr.bf16.mxu0 %v5071_v61 }
0x1f17   :  { %5074 = vmatpush3.bf16.msra.mxu0 %v5071_v61 }
0x1f18   :  { %5076 = vmatprep.subr.bf16.mxu0 %v5075_v49 }
0x1f1b   :  { %5078 = vmatpush3.bf16.msra.mxu0 %v5075_v49 }
0x1f1c   :  { %5080 = vmatprep.subr.bf16.mxu0 %v5079_v45 }
0x1f1f   :  { %5082 = vmatpush3.bf16.msra.mxu0 %v5079_v45 }
0x1f20   :  { %5084 = vmatprep.subr.bf16.mxu0 %v5083_v52 }
0x1f23   :  { %5086 = vmatpush3.bf16.msra.mxu0 %v5083_v52  ;;  %v4514_v52 = vld [vmem:[%s6067_s15 + $0x1] ss:$0 sm:$0xff] }
0x1f24   :  { %5088 = vmatprep.subr.bf16.mxu0 %v5087_v55 }
0x1f27   :  { %5090 = vmatpush3.bf16.msra.mxu0 %v5087_v55 }
0x1fe2   :  { %v4948_v58 = vpop.f32.mrb[52].mxu1 }
0x1fe3   :  { %v4099_v59 = vadd.f32 %v4948_v58, %v4490_v57  ;;  %v4093_v60 = vpop.f32.mrb[53].mxu1 }
0x1fe4   :  { %v4094_v62 = vadd.f32 %v4490_v57, %v4093_v60 }
0x1fe5   :  { %v4105_v63 = vmul.f32 0.044715, %v4099_v59  ;;  %v4103_v0 = vmul.f32 0.5, %v4099_v59 }
0x1fe6   :  { %v4104_v2 = vmul.f32 0.044715, %v4094_v62  ;;  %v4102_v21 = vmul.f32 0.5, %v4094_v62 }
0x1fe7   :  { %v4107_v3 = vmul.f32 %v4105_v63, %v4099_v59 }
0x1fe8   :  { %v4106_v4 = vmul.f32 %v4104_v2, %v4094_v62 }
0x1fe9   :  { %v4109_v1 = vmul.f32 %v4107_v3, %v4099_v59 }
0x1fea   :  { %v4108_v5 = vmul.f32 %v4106_v4, %v4094_v62 }
0x1feb   :  { %v4111_v7 = vadd.f32 %v4109_v1, %v4099_v59 }
0x1fec   :  { %v4110_v8 = vadd.f32 %v4108_v5, %v4094_v62 }
0x1fed   :  { %v4113_v9 = vmul.f32 0.7978846, %v4111_v7 }
0x1fee   :  { %v4112_v32 = vmul.f32 0.7978846, %v4110_v8 }
0x1fef   :  { %5210 = vtanh.f32 %v4113_v9 }
0x1ff0   :  { %5212 = vtanh.f32 %v4112_v32 }
0x1ff9   :  { %v5211_v43 = vpop.eup %5210 }
0x1ffa   :  { %v5213_v39 = vpop.eup %5212  ;;  %v4117_v22 = vadd.f32 1.0, %v5211_v43 }
0x1ffb   :  { %v4116_v10 = vadd.f32 1.0, %v5213_v39 }
0x1ffc   :  { %v4119_v6 = vmul.f32 %v4117_v22, %v4103_v0 }
0x1ffd   :  { %v4118_v11 = vmul.f32 %v4116_v10, %v4102_v21 }
0x1fff   :  { %4981 = vmatprep.mubr.f32.mxu0 %v4118_v11 }
0x2000   :  { %4982 = vmatmul.mubr.f32.vlgmr.msra.gmra.mrb[24].mxu0 %v4119_v6 }
0x20d3   :  { %v4983_v41 = vpop.f32.mrb[24].mxu0 }
0x20d4   :  { %v4217_v13 = vadd.f32 %v4983_v41, %v4510_v12  ;;  %v4211_v14 = vpop.f32.mrb[25].mxu0 }
0x20d5   :  { %v4212_v15 = vadd.f32 %v4510_v12, %v4211_v14 }
0x20d6   :  { %v4221_v16 = vadd.f32 %v4217_v13, %v5944_v33 }
0x20d7   :  { %v4220_v17 = vadd.f32 %v4212_v15, %v5942_v56  ;;  %v4276_v56 = vld [vmem:[%s6068_s16] sm:$0xff] }
0x20d8   :  { %v4229_v18 = vsel %vm91_vm0, %v4221_v16, 0.0  ;;  %v5092_v29 = vpack.c.bf16 %v4277_v37, %v4276_v56 }
0x20d9   :  { %4230 = vadd.xlane.f32.xlu0 %v4229_v18  ;;  %v4226_v19 = vsel %vm91_vm0, %v4220_v17, 0.0 }
0x20da   :  { %4227 = vadd.xlane.f32.xlu1 %v4226_v19  ;;  %5093 = vmatpush3.bf16.msra.mxu1 %v5092_v29 }
0x20db   :  { %5094 = vmatprep.subr.bf16.mxu1 %v5280_v42 }
0x20de   :  { %5096 = vmatpush3.bf16.msra.mxu1 %v5095_v36 }
0x2166   :  { %v4231_v20 = vpop.xlane.xlu0 %4230 }
0x2167   :  { %v4233_v23 = vmul.f32 0.03125, %v4231_v20  ;;  %v4228_v24 = vpop.xlane.xlu1 %4227 }
0x2168   :  { %v4232_v27 = vmul.f32 0.03125, %v4228_v24 }
0x2169   :  { %v4235_v30 = vsub.f32 %v4221_v16, %v4233_v23 }
0x216a   :  { %v4234_v31 = vsub.f32 %v4220_v17, %v4232_v27 }
0x216b   :  { %v4237_v34 = vmul.f32 %v4235_v30, %v4235_v30 }
0x216c   :  { %v4236_v26 = vmul.f32 %v4234_v31, %v4234_v31 }
0x216d   :  { %v4241_v35 = vsel %vm91_vm0, %v4237_v34, 0.0 }
0x216e   :  { %4242 = vadd.xlane.f32.xlu0 %v4241_v35  ;;  %v4238_v33 = vsel %vm91_vm0, %v4236_v26, 0.0 }
0x216f   :  { %4239 = vadd.xlane.f32.xlu1 %v4238_v33 }
0x21fb   :  { %v4243_v44 = vpop.xlane.xlu0 %4242 }
0x21fc   :  { %v4245_v46 = vmul.f32 0.03125, %v4243_v44  ;;  %v4240_v61 = vpop.xlane.xlu1 %4239 }
0x21fd   :  { %v4244_v47 = vmul.f32 0.03125, %v4240_v61 }
0x21fe   :  { %v4247_v48 = vadd.f32 1e-12, %v4245_v46 }
0x21ff   :  { %v4246_v49 = vadd.f32 1e-12, %v4244_v47 }
0x2200   :  { %5214 = vrsqrt.f32 %v4247_v48 }
0x2201   :  { %5216 = vrsqrt.f32 %v4246_v49 }
0x220a   :  { %v5215_v25 = vpop.eup %5214 }
0x220b   :  { %v5217_v45 = vpop.eup %5216  ;;  %v4251_v51 = vmul.f32 %v5215_v25, %v4235_v30 }
0x220c   :  { %v4250_v28 = vmul.f32 %v5217_v45, %v4234_v31 }
0x220d   :  { %v4259_v53 = vmul.f32 %v4513_v50, %v4251_v51 }
0x220e   :  { %v4258_v54 = vmul.f32 %v4513_v50, %v4250_v28 }
0x220f   :  { %v4267_v55 = vadd.f32 %v4514_v52, %v4259_v53 }
0x2210   :  { %v4266_v57 = vadd.f32 %v4514_v52, %v4258_v54 }
0x2211   :  { %v4270_v58 = vrot.slane %v4267_v55, 7 }
0x2213   :  { %v4272_v59 = vsel %vm4271_vm3, %v4270_v58, %v4266_v57 }
0x2214   :  { %4993 = vmatmul.mubr.msk.f32.vlgmr.msra.gmra.mrb[54].mxu1 %vm91_vm0, %v4272_v59  ;;  %4275 = vst.msk [vmem:[#allocation4] sm:$0x3] %vm4274_vm4, %v4272_v59 }
0x2215   :  { %5229 = shalt.err (!%p5226_p4)
}
0x2216   :  { %s5230_s25 = scalar_lea.hbm %s6071_s19, 32 }
0x2217   :  { %p5231_p5 = scmp.ne.s32.totalorder %s6071_s19, %s5230_s25  ;;  %p5234_p6 = scmp.lt.u32.totalorder %s5230_s25, %s6071_s19 }
0x2219   :  { %p5236_p7 = pnand %p5234_p6, %p5231_p5 }
0x221b   :  { %5239 = shalt.err (!%p5236_p7)
}
0x221c   :  { %4379 = dma.vmem_to_hbm [thread:$0]  %s4377_s14, 32, %s6071_s19, [#allocation5]   ;;  %v4515_v60 = vld [vmem:[%s6069_s17] ss:$0 sm:$0xff] }
0x221d   :  { %s5282_s11 = smov [#allocation2]  }
0x221e   :  { %s4366_s12 = sshll.u32 %s5282_s11, 4  ;;  %s4367_s12 = int_to_ptr.vmem [resolvable:$true] %s4366_s12 }
0x221f   :  { %s5240_s13 = scalar_lea.vmem %s4367_s12, 32  ;;  %p5245_p9 = scmp.lt.s32.totalorder %s4367_s12, %s4367_s12 }
0x2220   :  { %p5241_p8 = scmp.ne.s32.totalorder %s4367_s12, %s5240_s13  ;;  %p5246_p10 = scmp.lt.s32.totalorder %s5240_s13, %s5240_s13 }
0x2222   :  { %p5247_p11 = por %p5246_p10, %p5245_p9 }
0x2224   :  { %p5248_p12 = pnand %p5247_p11, %p5241_p8 }
0x22e7   :  { %v4355_v62 = vpop.f32.mrb[54].mxu1 }
0x22e8   :  { %v4356_v63 = vadd.f32 %v4515_v60, %v4355_v62  ;;  %v4994_v2 = vpop.f32.mrb[55].mxu1 }
0x22ea   :  { %4359 = vst [vmem:[#allocation2] sm:$0x3] %v4356_v63 }
0x22eb   :  { %5251 = shalt.err (!%p5248_p12)
}
0x22ec   :  { %s5252_s5 = scalar_lea.hbm %s6070_s18, 32 }
0x22ed   :  { %p5253_p13 = scmp.ne.s32.totalorder %s6070_s18, %s5252_s5  ;;  %p5256_p0 = scmp.lt.u32.totalorder %s5252_s5, %s6070_s18 }
0x22ef   :  { %p5258_p1 = pnand %p5256_p0, %p5253_p13 }
0x22f1   :  { %5261 = shalt.err (!%p5258_p1)
}
0x22f2   :  { %4369 = dma.vmem_to_hbm [thread:$0]  %s4367_s12, 32, %s6070_s18, [#allocation3]  }
0x22f3   :  { %5262 = dma.done.wait [#allocation3], 32  }
0x22f4   :  { %5263 = vsyncadd [#allocation3], 4294967264 }
0x22f5   :  { %5264 = dma.done.wait [#allocation5], 32  }
0x22f6   :  { %5265 = vsyncadd [#allocation5], 4294967264 }
0x22f7   :  { %4386 = vsyncpa [#allocation3], 1 }
0x22f8   :  { %4387 = vsyncpa [#allocation5], 1 }

</bundles_post_ra>
